<compile_context>
chip_gen: v7x
topology: tpu7x:2x2x1
jax: 0.10.0
libtpu: 0.0.40
codegen_flags: <defaults>
</compile_context>

<pallas_src>
import functools
import math

import jax
import jax.numpy as jnp
import numpy as np
from jax.experimental import pallas as pl
from jax.experimental.pallas import tpu as pltpu

LN_EPS = 1e-5
INV_SQRT2 = 1.0 / math.sqrt(2.0)


# ----------------------------- shared math ---------------------------------
def _ln_normalize(x):
    mu = jnp.mean(x, axis=-1, keepdims=True)
    xc = x - mu
    var = jnp.mean(xc * xc, axis=-1, keepdims=True)
    return xc * jax.lax.rsqrt(var + LN_EPS)


def _layernorm(x, g, b):
    return _ln_normalize(x) * g + b


def _gelu_exact(x):
    # matches torch.nn.GELU() (erf formulation)
    return 0.5 * x * (1.0 + jax.lax.erf(x * INV_SQRT2))


def _sigmoid_exact(x):
    return 1.0 / (1.0 + jnp.exp(-x))


# ------------------------------- fused kernel --------------------------------
def fused_kernel(lat_ref, act_ref,
                 w_lat_ref, b_lat_ref, w_act_ref, b_act_ref, pos_ref,
                 ln1_g_ref, ln1_b_ref, wqkv_ref, bqkv_ref, wproj_ref, bproj_ref,
                 ln2_g_ref, ln2_b_ref, w1_ref, b1_ref, w2_ref, b2_ref,
                 wh_ref, bh_ref,
                 out_ref, *, num_heads, num_layers, latent_size):
    # TODO(synk): attention_mask path not implemented (forward exercised with mask=None).
    lat = lat_ref[0]                                    # (T, L) f32
    act = act_ref[0]                                    # (T, A) f32
    T = lat.shape[0]
    C = w_lat_ref.shape[1]
    H = num_heads
    D = C // H
    scale = 1.0 / math.sqrt(D)
    bf16 = jnp.bfloat16

    # ----------------- embeddings (latent MXU, action on VPU) -----------------
    x = jnp.dot(lat.astype(bf16), w_lat_ref[...],
                preferred_element_type=jnp.float32) + b_lat_ref[...]
    A = act.shape[1]
    for a in range(A):                                  # action_size is tiny -> broadcast mult
        x = x + act[:, a:a + 1] * w_act_ref[a:a + 1, :]
    x = x + b_act_ref[...] + pos_ref[...]               # (T, C) f32 residual stream

    # ----------------------- transformer layers (resident) --------------------
    def layer(l, x):
        # --- multi-head self-attention ---
        h = _layernorm(x, ln1_g_ref[l], ln1_b_ref[l])
        qkv = jnp.dot(h.astype(bf16), wqkv_ref[l],
                      preferred_element_type=jnp.float32) + bqkv_ref[l]   # (T, 3C)
        q = qkv[:, :C]
        k = qkv[:, C:2 * C]
        v = qkv[:, 2 * C:]
        # (H, T, D) head batches from static lane slices
        qh = jnp.stack([q[:, hh * D:(hh + 1) * D] for hh in range(H)], axis=0)
        kh = jnp.stack([k[:, hh * D:(hh + 1) * D] for hh in range(H)], axis=0)
        vh = jnp.stack([v[:, hh * D:(hh + 1) * D] for hh in range(H)], axis=0)
        # batched scores + softmax (f32)
        s = jnp.einsum("htd,hsd->hts", qh.astype(bf16), kh.astype(bf16),
                       preferred_element_type=jnp.float32) * scale
        s = s - jnp.max(s, axis=-1, keepdims=True)
        e = jnp.exp(s)
        p = e * pl.reciprocal(jnp.sum(e, axis=-1, keepdims=True), approx=True)
        o = jnp.einsum("hts,hsd->htd", p.astype(bf16), vh.astype(bf16),
                       preferred_element_type=jnp.float32)                # (H, T, D)
        attn = jnp.concatenate([o[hh] for hh in range(H)], axis=-1)       # (T, C) head-major
        attn = jnp.dot(attn.astype(bf16), wproj_ref[l],
                       preferred_element_type=jnp.float32) + bproj_ref[l]
        x = x + attn

        # --- MLP ---
        h2 = _layernorm(x, ln2_g_ref[l], ln2_b_ref[l])
        m = jnp.dot(h2.astype(bf16), w1_ref[l],
                    preferred_element_type=jnp.float32) + b1_ref[l]
        m = _gelu_exact(m)
        m = jnp.dot(m.astype(bf16), w2_ref[l],
                    preferred_element_type=jnp.float32) + b2_ref[l]
        return x + m

    x = jax.lax.fori_loop(0, num_layers, layer, x)

    # -------- fused prediction heads (shared LN stats, affine folded in) ------
    hn = _ln_normalize(x)
    z = jnp.dot(hn.astype(bf16), wh_ref[...],
                preferred_element_type=jnp.float32) + bh_ref[...]          # (T, 128)
    col = jax.lax.broadcasted_iota(jnp.int32, z.shape, 1)
    sig = pl.reciprocal(1.0 + jnp.exp(-z), approx=True)
    out_ref[0] = jnp.where(col == latent_size + 1, sig, z)


# ------------------------------ wrappers -------------------------------------
def _bcast_spec(a):
    # full-array block, constant block index -> DMA'd once across the batch grid
    return pl.BlockSpec(a.shape, lambda b, _n=a.ndim: (0,) * _n)


def _pack_params(p):
    """Stack per-layer weights, cast matmul weights to bf16, fold head LN affine
    into a single lane-dense (C, >=128) combined head weight."""
    bf = jnp.bfloat16

    def stack(name):
        return jnp.stack([lp[name] for lp in p["layers"]], axis=0)

    packed = dict(
        w_lat=p["w_lat"].astype(bf), b_lat=p["b_lat"],
        w_act=p["w_act"], b_act=p["b_act"],
        ln1_g=stack("ln1_g"), ln1_b=stack("ln1_b"),
        wqkv=stack("wqkv").astype(bf), bqkv=stack("bqkv"),
        wproj=stack("wproj").astype(bf), bproj=stack("bproj"),
        ln2_g=stack("ln2_g"), ln2_b=stack("ln2_b"),
        w1=stack("w1").astype(bf), b1=stack("b1"),
        w2=stack("w2").astype(bf), b2=stack("b2"),
    )

    # Head fold: LN(x) = norm(x)*g + b, so (norm*g + b) @ W = norm @ (g^T * W) + b @ W.
    C = p["s_w"].shape[0]
    L = p["s_w"].shape[1]
    w_state = p["s_g"].T * p["s_w"]                                       # (C, L)
    b_state = p["s_b"] @ p["s_w"] + p["s_bias"]                           # (1, L)
    w_reward = (p["r_g"] * p["r_w"]).T                                    # (C, 1)
    b_reward = jnp.sum(p["r_b"] * p["r_w"], axis=-1, keepdims=True) + p["r_bias"]
    w_done = (p["d_g"] * p["d_w"]).T                                      # (C, 1)
    b_done = jnp.sum(p["d_b"] * p["d_w"], axis=-1, keepdims=True) + p["d_bias"]

    ncols = L + 2
    head_cols = max(128, ((ncols + 127) // 128) * 128)
    pad = head_cols - ncols
    packed["w_heads"] = jnp.concatenate(
        [w_state, w_reward, w_done, jnp.zeros((C, pad), jnp.float32)], axis=1).astype(bf)
    packed["b_heads"] = jnp.concatenate(
        [b_state, b_reward, b_done, jnp.zeros((1, pad), jnp.float32)], axis=1)
    return packed, head_cols


def world_model_forward(latents, actions, params, *, num_heads):
    B, T, L = latents.shape
    A = actions.shape[-1]
    num_layers = len(params["layers"])
    packed, head_cols = _pack_params(params)
    pos = params["pos"][:T]

    weights = [packed["w_lat"], packed["b_lat"], packed["w_act"], packed["b_act"], pos,
               packed["ln1_g"], packed["ln1_b"], packed["wqkv"], packed["bqkv"],
               packed["wproj"], packed["bproj"], packed["ln2_g"], packed["ln2_b"],
               packed["w1"], packed["b1"], packed["w2"], packed["b2"],
               packed["w_heads"], packed["b_heads"]]

    out = pl.pallas_call(
        functools.partial(fused_kernel, num_heads=num_heads,
                          num_layers=num_layers, latent_size=L),
        out_shape=jax.ShapeDtypeStruct((B, T, head_cols), jnp.float32),
        grid=(B,),
        in_specs=[pl.BlockSpec((1, T, L), lambda b: (b, 0, 0)),
                  pl.BlockSpec((1, T, A), lambda b: (b, 0, 0))]
                 + [_bcast_spec(w) for w in weights],
        out_specs=pl.BlockSpec((1, T, head_cols), lambda b: (b, 0, 0)),
        compiler_params=pltpu.CompilerParams(dimension_semantics=("parallel",)),
    )(latents, actions, *weights)

    next_state = out[..., :L]
    reward = out[..., L:L + 1]
    done = out[..., L + 1:L + 2]
    return next_state, reward, done


# ----------------------------- parameters ------------------------------------
def init_params(key, *, latent_size, hidden_size, num_layers, num_heads,
                max_seq_length, action_size):
    C = hidden_size
    n_keys = 16 + 8 * num_layers
    keys = iter(jax.random.split(key, n_keys))

    def w(shape, scale=0.02):
        return (scale * jax.random.normal(next(keys), shape)).astype(jnp.float32)

    params = dict(
        w_lat=w((latent_size, C)), b_lat=w((1, C)),
        w_act=w((action_size, C)), b_act=w((1, C)),
        pos=w((max_seq_length, C)),
        layers=[],
        # state head
        s_g=jnp.ones((1, C), jnp.float32), s_b=jnp.zeros((1, C), jnp.float32),
        s_w=w((C, latent_size)), s_bias=w((1, latent_size)),
        # reward head (weight stored as (1, C) row-vector)
        r_g=jnp.ones((1, C), jnp.float32), r_b=jnp.zeros((1, C), jnp.float32),
        r_w=w((1, C)), r_bias=w((1, 1)),
        # done head
        d_g=jnp.ones((1, C), jnp.float32), d_b=jnp.zeros((1, C), jnp.float32),
        d_w=w((1, C)), d_bias=w((1, 1)),
    )
    for _ in range(num_layers):
        params["layers"].append(dict(
            ln1_g=jnp.ones((1, C), jnp.float32), ln1_b=jnp.zeros((1, C), jnp.float32),
            wqkv=w((C, 3 * C)), bqkv=w((1, 3 * C)),
            wproj=w((C, C)), bproj=w((1, C)),
            ln2_g=jnp.ones((1, C), jnp.float32), ln2_b=jnp.zeros((1, C), jnp.float32),
            w1=w((C, 4 * C)), b1=w((1, 4 * C)),
            w2=w((4 * C, C)), b2=w((1, C)),
        ))
    return params


# ---------------------------- pure-JAX reference -----------------------------
def reference_forward(latents, actions, p, num_heads):
    T = latents.shape[1]
    h = latents @ p["w_lat"] + p["b_lat"] + actions @ p["w_act"] + p["b_act"]
    h = h + p["pos"][:T][None]
    for lp in p["layers"]:
        x = h
        n = _layernorm(x, lp["ln1_g"], lp["ln1_b"])
        qkv = n @ lp["wqkv"] + lp["bqkv"]
        B, T, C = x.shape
        D = C // num_heads
        q, k, v = jnp.split(qkv, 3, axis=-1)
        q = q.reshape(B, T, num_heads, D).transpose(0, 2, 1, 3)
        k = k.reshape(B, T, num_heads, D).transpose(0, 2, 1, 3)
        v = v.reshape(B, T, num_heads, D).transpose(0, 2, 1, 3)
        s = jnp.einsum("bhtd,bhsd->bhts", q, k) / math.sqrt(D)
        a = jax.nn.softmax(s, axis=-1)
        o = jnp.einsum("bhts,bhsd->bhtd", a, v)
        o = o.transpose(0, 2, 1, 3).reshape(B, T, C)
        x = x + o @ lp["wproj"] + lp["bproj"]
        n2 = _layernorm(x, lp["ln2_g"], lp["ln2_b"])
        m = _gelu_exact(n2 @ lp["w1"] + lp["b1"])
        h = x + m @ lp["w2"] + lp["b2"]
    next_state = _layernorm(h, p["s_g"], p["s_b"]) @ p["s_w"] + p["s_bias"]
    reward = jnp.sum(_layernorm(h, p["r_g"], p["r_b"]) * p["r_w"], axis=-1,
                     keepdims=True) + p["r_bias"]
    done = _sigmoid_exact(jnp.sum(_layernorm(h, p["d_g"], p["d_b"]) * p["d_w"],
                                  axis=-1, keepdims=True) + p["d_bias"])
    return next_state, reward, done


# --------------------------------- main ---------------------------------------
if __name__ == "__main__":
    B, T = 2, 8
    latent_size = 32
    hidden_size = 128
    num_layers = 2
    num_heads = 4
    max_seq_length = 8
    action_size = 1

    key = jax.random.PRNGKey(0)
    kp, kl, ka = jax.random.split(key, 3)
    params = init_params(kp, latent_size=latent_size, hidden_size=hidden_size,
                         num_layers=num_layers, num_heads=num_heads,
                         max_seq_length=max_seq_length, action_size=action_size)

    latents = jax.random.normal(kl, (B, T, latent_size), jnp.float32)
    actions = jax.random.normal(ka, (B, T, action_size), jnp.float32)

    fwd = jax.jit(functools.partial(world_model_forward, num_heads=num_heads))
    next_state, reward, done = fwd(latents, actions, params)
    jax.block_until_ready((next_state, reward, done))

    ns_ref, rw_ref, dn_ref = reference_forward(latents, actions, params, num_heads)
    # bf16 MXU matmuls vs f32 reference -> relaxed tolerance
    np.testing.assert_allclose(np.asarray(next_state), np.asarray(ns_ref),
                               rtol=2e-2, atol=2e-2)
    np.testing.assert_allclose(np.asarray(reward), np.asarray(rw_ref),
                               rtol=2e-2, atol=2e-2)
    np.testing.assert_allclose(np.asarray(done), np.asarray(dn_ref),
                               rtol=2e-2, atol=2e-2)

    print("KERNEL_OK")
</pallas_src>

<mosaic_0001>
module attributes {stable_mosaic.version = 11 : i64} {
  func.func @fused_kernel(%arg0: i32, %arg1: memref<1x8x32xf32, #tpu.memory_space<vmem>>, %arg2: memref<1x8x1xf32, #tpu.memory_space<vmem>>, %arg3: memref<32x128xbf16, #tpu.memory_space<vmem>>, %arg4: memref<1x128xf32, #tpu.memory_space<vmem>>, %arg5: memref<1x128xf32, #tpu.memory_space<vmem>>, %arg6: memref<1x128xf32, #tpu.memory_space<vmem>>, %arg7: memref<8x128xf32, #tpu.memory_space<vmem>>, %arg8: memref<2x1x128xf32, #tpu.memory_space<vmem>>, %arg9: memref<2x1x128xf32, #tpu.memory_space<vmem>>, %arg10: memref<2x128x384xbf16, #tpu.memory_space<vmem>>, %arg11: memref<2x1x384xf32, #tpu.memory_space<vmem>>, %arg12: memref<2x128x128xbf16, #tpu.memory_space<vmem>>, %arg13: memref<2x1x128xf32, #tpu.memory_space<vmem>>, %arg14: memref<2x1x128xf32, #tpu.memory_space<vmem>>, %arg15: memref<2x1x128xf32, #tpu.memory_space<vmem>>, %arg16: memref<2x128x512xbf16, #tpu.memory_space<vmem>>, %arg17: memref<2x1x512xf32, #tpu.memory_space<vmem>>, %arg18: memref<2x512x128xbf16, #tpu.memory_space<vmem>>, %arg19: memref<2x1x128xf32, #tpu.memory_space<vmem>>, %arg20: memref<128x128xbf16, #tpu.memory_space<vmem>>, %arg21: memref<1x128xf32, #tpu.memory_space<vmem>>, %arg22: memref<1x8x128xf32, #tpu.memory_space<vmem>>) attributes {dimension_semantics = [#tpu.dimension_semantics<parallel>], iteration_bounds = array<i64: 2>, scalar_prefetch = 0 : i64, scratch_operands = 0 : i64, tpu.core_type = #tpu.core_type<tc>, window_params = [{transform_indices = @transform_0, window_bounds = array<i64: 1, 8, 32>}, {transform_indices = @transform_1, window_bounds = array<i64: 1, 8, 1>}, {pipeline_mode = #tpu.pipeline_mode<synchronous>, transform_indices = @transform_2, window_bounds = array<i64: 32, 128>}, {pipeline_mode = #tpu.pipeline_mode<synchronous>, transform_indices = @transform_3, window_bounds = array<i64: 1, 128>}, {pipeline_mode = #tpu.pipeline_mode<synchronous>, transform_indices = @transform_4, window_bounds = array<i64: 1, 128>}, {pipeline_mode = #tpu.pipeline_mode<synchronous>, transform_indices = @transform_5, window_bounds = array<i64: 1, 128>}, {pipeline_mode = #tpu.pipeline_mode<synchronous>, transform_indices = @transform_6, window_bounds = array<i64: 8, 128>}, {pipeline_mode = #tpu.pipeline_mode<synchronous>, transform_indices = @transform_7, window_bounds = array<i64: 2, 1, 128>}, {pipeline_mode = #tpu.pipeline_mode<synchronous>, transform_indices = @transform_8, window_bounds = array<i64: 2, 1, 128>}, {pipeline_mode = #tpu.pipeline_mode<synchronous>, transform_indices = @transform_9, window_bounds = array<i64: 2, 128, 384>}, {pipeline_mode = #tpu.pipeline_mode<synchronous>, transform_indices = @transform_10, window_bounds = array<i64: 2, 1, 384>}, {pipeline_mode = #tpu.pipeline_mode<synchronous>, transform_indices = @transform_11, window_bounds = array<i64: 2, 128, 128>}, {pipeline_mode = #tpu.pipeline_mode<synchronous>, transform_indices = @transform_12, window_bounds = array<i64: 2, 1, 128>}, {pipeline_mode = #tpu.pipeline_mode<synchronous>, transform_indices = @transform_13, window_bounds = array<i64: 2, 1, 128>}, {pipeline_mode = #tpu.pipeline_mode<synchronous>, transform_indices = @transform_14, window_bounds = array<i64: 2, 1, 128>}, {pipeline_mode = #tpu.pipeline_mode<synchronous>, transform_indices = @transform_15, window_bounds = array<i64: 2, 128, 512>}, {pipeline_mode = #tpu.pipeline_mode<synchronous>, transform_indices = @transform_16, window_bounds = array<i64: 2, 1, 512>}, {pipeline_mode = #tpu.pipeline_mode<synchronous>, transform_indices = @transform_17, window_bounds = array<i64: 2, 512, 128>}, {pipeline_mode = #tpu.pipeline_mode<synchronous>, transform_indices = @transform_18, window_bounds = array<i64: 2, 1, 128>}, {pipeline_mode = #tpu.pipeline_mode<synchronous>, transform_indices = @transform_19, window_bounds = array<i64: 128, 128>}, {pipeline_mode = #tpu.pipeline_mode<synchronous>, transform_indices = @transform_20, window_bounds = array<i64: 1, 128>}, {transform_indices = @transform_21, window_bounds = array<i64: 1, 8, 128>}]} {
    %c0 = arith.constant 0 : index
    %c0_0 = arith.constant 0 : index
    %c0_1 = arith.constant 0 : index
    %0 = vector.load %arg1[%c0, %c0_0, %c0_1] : memref<1x8x32xf32, #tpu.memory_space<vmem>>, vector<1x8x32xf32>
    %1 = vector.shape_cast %0 : vector<1x8x32xf32> to vector<8x32xf32>
    %c0_2 = arith.constant 0 : index
    %c0_3 = arith.constant 0 : index
    %c0_4 = arith.constant 0 : index
    %2 = vector.load %arg2[%c0_2, %c0_3, %c0_4] : memref<1x8x1xf32, #tpu.memory_space<vmem>>, vector<1x8x1xf32>
    %3 = vector.shape_cast %2 : vector<1x8x1xf32> to vector<8x1xf32>
    %4 = arith.truncf %1 : vector<8x32xf32> to vector<8x32xbf16>
    %c0_5 = arith.constant 0 : index
    %c0_6 = arith.constant 0 : index
    %5 = vector.load %arg3[%c0_5, %c0_6] : memref<32x128xbf16, #tpu.memory_space<vmem>>, vector<32x128xbf16>
    %cst = arith.constant dense<0.000000e+00> : vector<8x128xf32>
    %6 = tpu.matmul %4, %5, %cst {dimension_numbers = #tpu.dot_dimension_numbers<[1], [0], [0], [1], [0, 0, 1, 1], [], []>} : vector<8x32xbf16>, vector<32x128xbf16>, vector<8x128xf32> -> vector<8x128xf32>
    %c0_7 = arith.constant 0 : index
    %c0_8 = arith.constant 0 : index
    %7 = vector.load %arg4[%c0_7, %c0_8] : memref<1x128xf32, #tpu.memory_space<vmem>>, vector<1x128xf32>
    %8 = vector.broadcast %7 : vector<1x128xf32> to vector<8x128xf32>
    %9 = arith.addf %6, %8 : vector<8x128xf32>
    %c0_9 = arith.constant 0 : index
    %c0_10 = arith.constant 0 : index
    %10 = vector.load %arg5[%c0_9, %c0_10] : memref<1x128xf32, #tpu.memory_space<vmem>>, vector<1x128xf32>
    %11 = vector.broadcast %3 : vector<8x1xf32> to vector<8x128xf32>
    %12 = vector.broadcast %10 : vector<1x128xf32> to vector<8x128xf32>
    %13 = arith.mulf %11, %12 : vector<8x128xf32>
    %14 = arith.addf %9, %13 : vector<8x128xf32>
    %c0_11 = arith.constant 0 : index
    %c0_12 = arith.constant 0 : index
    %15 = vector.load %arg6[%c0_11, %c0_12] : memref<1x128xf32, #tpu.memory_space<vmem>>, vector<1x128xf32>
    %16 = vector.broadcast %15 : vector<1x128xf32> to vector<8x128xf32>
    %17 = arith.addf %14, %16 : vector<8x128xf32>
    %c0_13 = arith.constant 0 : index
    %c0_14 = arith.constant 0 : index
    %18 = vector.load %arg7[%c0_13, %c0_14] : memref<8x128xf32, #tpu.memory_space<vmem>>, vector<8x128xf32>
    %19 = arith.addf %17, %18 : vector<8x128xf32>
    %c0_i32 = arith.constant 0 : i32
    %c2_i32 = arith.constant 2 : i32
    %20 = arith.addi %c0_i32, %c2_i32 : i32
    %c1_i32 = arith.constant 1 : i32
    %21 = scf.for %arg23 = %c0_i32 to %20 step %c1_i32 iter_args(%arg24 = %19) -> (vector<8x128xf32>)  : i32 {
      %57 = arith.index_cast %arg23 : i32 to index
      %c0_31 = arith.constant 0 : index
      %c0_32 = arith.constant 0 : index
      %58 = vector.load %arg8[%57, %c0_31, %c0_32] : memref<2x1x128xf32, #tpu.memory_space<vmem>>, vector<1x1x128xf32>
      %59 = vector.shape_cast %58 : vector<1x1x128xf32> to vector<1x128xf32>
      %60 = arith.index_cast %arg23 : i32 to index
      %c0_33 = arith.constant 0 : index
      %c0_34 = arith.constant 0 : index
      %61 = vector.load %arg9[%60, %c0_33, %c0_34] : memref<2x1x128xf32, #tpu.memory_space<vmem>>, vector<1x1x128xf32>
      %62 = vector.shape_cast %61 : vector<1x1x128xf32> to vector<1x128xf32>
      %cst_35 = arith.constant dense<0.000000e+00> : vector<8xf32>
      %63 = vector.multi_reduction <add>, %arg24, %cst_35 [1] : vector<8x128xf32> to vector<8xf32>
      %64 = vector.shape_cast %63 : vector<8xf32> to vector<8x1xf32>
      %cst_36 = arith.constant 1.280000e+02 : f32
      %65 = vector.broadcast %cst_36 : f32 to vector<8x1xf32>
      %66 = arith.divf %64, %65 : vector<8x1xf32>
      %67 = vector.broadcast %66 : vector<8x1xf32> to vector<8x128xf32>
      %68 = arith.subf %arg24, %67 : vector<8x128xf32>
      %69 = arith.mulf %68, %68 : vector<8x128xf32>
      %cst_37 = arith.constant dense<0.000000e+00> : vector<8xf32>
      %70 = vector.multi_reduction <add>, %69, %cst_37 [1] : vector<8x128xf32> to vector<8xf32>
      %71 = vector.shape_cast %70 : vector<8xf32> to vector<8x1xf32>
      %cst_38 = arith.constant 1.280000e+02 : f32
      %72 = vector.broadcast %cst_38 : f32 to vector<8x1xf32>
      %73 = arith.divf %71, %72 : vector<8x1xf32>
      %cst_39 = arith.constant 9.99999974E-6 : f32
      %74 = vector.broadcast %cst_39 : f32 to vector<8x1xf32>
      %75 = arith.addf %73, %74 : vector<8x1xf32>
      %76 = math.rsqrt %75 : vector<8x1xf32>
      %77 = vector.broadcast %76 : vector<8x1xf32> to vector<8x128xf32>
      %78 = arith.mulf %68, %77 : vector<8x128xf32>
      %79 = vector.broadcast %59 : vector<1x128xf32> to vector<8x128xf32>
      %80 = arith.mulf %78, %79 : vector<8x128xf32>
      %81 = vector.broadcast %62 : vector<1x128xf32> to vector<8x128xf32>
      %82 = arith.addf %80, %81 : vector<8x128xf32>
      %83 = arith.truncf %82 : vector<8x128xf32> to vector<8x128xbf16>
      %84 = arith.index_cast %arg23 : i32 to index
      %c0_40 = arith.constant 0 : index
      %c0_41 = arith.constant 0 : index
      %85 = vector.load %arg10[%84, %c0_40, %c0_41] : memref<2x128x384xbf16, #tpu.memory_space<vmem>>, vector<1x128x384xbf16>
      %86 = vector.shape_cast %85 : vector<1x128x384xbf16> to vector<128x384xbf16>
      %cst_42 = arith.constant dense<0.000000e+00> : vector<8x384xf32>
      %87 = tpu.matmul %83, %86, %cst_42 {dimension_numbers = #tpu.dot_dimension_numbers<[1], [0], [0], [1], [0, 0, 1, 1], [], []>} : vector<8x128xbf16>, vector<128x384xbf16>, vector<8x384xf32> -> vector<8x384xf32>
      %88 = arith.index_cast %arg23 : i32 to index
      %c0_43 = arith.constant 0 : index
      %c0_44 = arith.constant 0 : index
      %89 = vector.load %arg11[%88, %c0_43, %c0_44] : memref<2x1x384xf32, #tpu.memory_space<vmem>>, vector<1x1x384xf32>
      %90 = vector.shape_cast %89 : vector<1x1x384xf32> to vector<1x384xf32>
      %91 = vector.broadcast %90 : vector<1x384xf32> to vector<8x384xf32>
      %92 = arith.addf %87, %91 : vector<8x384xf32>
      %93 = vector.extract_strided_slice %92 {offsets = [0, 0], sizes = [8, 128], strides = [1, 1]} : vector<8x384xf32> to vector<8x128xf32>
      %94 = vector.extract_strided_slice %92 {offsets = [0, 128], sizes = [8, 128], strides = [1, 1]} : vector<8x384xf32> to vector<8x128xf32>
      %95 = vector.extract_strided_slice %92 {offsets = [0, 256], sizes = [8, 128], strides = [1, 1]} : vector<8x384xf32> to vector<8x128xf32>
      %96 = vector.extract_strided_slice %93 {offsets = [0, 0], sizes = [8, 32], strides = [1, 1]} : vector<8x128xf32> to vector<8x32xf32>
      %97 = vector.extract_strided_slice %93 {offsets = [0, 32], sizes = [8, 32], strides = [1, 1]} : vector<8x128xf32> to vector<8x32xf32>
      %98 = vector.extract_strided_slice %93 {offsets = [0, 64], sizes = [8, 32], strides = [1, 1]} : vector<8x128xf32> to vector<8x32xf32>
      %99 = vector.extract_strided_slice %93 {offsets = [0, 96], sizes = [8, 32], strides = [1, 1]} : vector<8x128xf32> to vector<8x32xf32>
      %100 = vector.shape_cast %96 : vector<8x32xf32> to vector<1x8x32xf32>
      %101 = vector.shape_cast %97 : vector<8x32xf32> to vector<1x8x32xf32>
      %102 = vector.shape_cast %98 : vector<8x32xf32> to vector<1x8x32xf32>
      %103 = vector.shape_cast %99 : vector<8x32xf32> to vector<1x8x32xf32>
      %104 = tpu.concatenate %100, %101, %102, %103 in 0 : vector<1x8x32xf32>, vector<1x8x32xf32>, vector<1x8x32xf32>, vector<1x8x32xf32> -> vector<4x8x32xf32>
      %105 = vector.extract_strided_slice %94 {offsets = [0, 0], sizes = [8, 32], strides = [1, 1]} : vector<8x128xf32> to vector<8x32xf32>
      %106 = vector.extract_strided_slice %94 {offsets = [0, 32], sizes = [8, 32], strides = [1, 1]} : vector<8x128xf32> to vector<8x32xf32>
      %107 = vector.extract_strided_slice %94 {offsets = [0, 64], sizes = [8, 32], strides = [1, 1]} : vector<8x128xf32> to vector<8x32xf32>
      %108 = vector.extract_strided_slice %94 {offsets = [0, 96], sizes = [8, 32], strides = [1, 1]} : vector<8x128xf32> to vector<8x32xf32>
      %109 = vector.shape_cast %105 : vector<8x32xf32> to vector<1x8x32xf32>
      %110 = vector.shape_cast %106 : vector<8x32xf32> to vector<1x8x32xf32>
      %111 = vector.shape_cast %107 : vector<8x32xf32> to vector<1x8x32xf32>
      %112 = vector.shape_cast %108 : vector<8x32xf32> to vector<1x8x32xf32>
      %113 = tpu.concatenate %109, %110, %111, %112 in 0 : vector<1x8x32xf32>, vector<1x8x32xf32>, vector<1x8x32xf32>, vector<1x8x32xf32> -> vector<4x8x32xf32>
      %114 = vector.extract_strided_slice %95 {offsets = [0, 0], sizes = [8, 32], strides = [1, 1]} : vector<8x128xf32> to vector<8x32xf32>
      %115 = vector.extract_strided_slice %95 {offsets = [0, 32], sizes = [8, 32], strides = [1, 1]} : vector<8x128xf32> to vector<8x32xf32>
      %116 = vector.extract_strided_slice %95 {offsets = [0, 64], sizes = [8, 32], strides = [1, 1]} : vector<8x128xf32> to vector<8x32xf32>
      %117 = vector.extract_strided_slice %95 {offsets = [0, 96], sizes = [8, 32], strides = [1, 1]} : vector<8x128xf32> to vector<8x32xf32>
      %118 = vector.shape_cast %114 : vector<8x32xf32> to vector<1x8x32xf32>
      %119 = vector.shape_cast %115 : vector<8x32xf32> to vector<1x8x32xf32>
      %120 = vector.shape_cast %116 : vector<8x32xf32> to vector<1x8x32xf32>
      %121 = vector.shape_cast %117 : vector<8x32xf32> to vector<1x8x32xf32>
      %122 = tpu.concatenate %118, %119, %120, %121 in 0 : vector<1x8x32xf32>, vector<1x8x32xf32>, vector<1x8x32xf32>, vector<1x8x32xf32> -> vector<4x8x32xf32>
      %123 = arith.truncf %104 : vector<4x8x32xf32> to vector<4x8x32xbf16>
      %124 = arith.truncf %113 : vector<4x8x32xf32> to vector<4x8x32xbf16>
      "tpu.trace_start"() <{level = 10 : i32, message = "htd,hsd->hts"}> : () -> ()
      %cst_45 = arith.constant dense<0.000000e+00> : vector<4x8x8xf32>
      %125 = tpu.matmul %123, %124, %cst_45 {dimension_numbers = #tpu.dot_dimension_numbers<[2], [2], [1], [1], [0, 0, 0, 1, 1, 1], [0], [0]>} : vector<4x8x32xbf16>, vector<4x8x32xbf16>, vector<4x8x8xf32> -> vector<4x8x8xf32>
      "tpu.trace_stop"() : () -> ()
      %cst_46 = arith.constant 0.176776692 : f32
      %126 = vector.broadcast %cst_46 : f32 to vector<4x8x8xf32>
      %127 = arith.mulf %125, %126 : vector<4x8x8xf32>
      %cst_47 = arith.constant dense<0xFF800000> : vector<4x8xf32>
      %128 = vector.multi_reduction <maximumf>, %127, %cst_47 [2] : vector<4x8x8xf32> to vector<4x8xf32>
      %129 = vector.shape_cast %128 : vector<4x8xf32> to vector<4x8x1xf32>
      %130 = vector.broadcast %129 : vector<4x8x1xf32> to vector<4x8x8xf32>
      %131 = arith.subf %127, %130 : vector<4x8x8xf32>
      %132 = math.exp %131 : vector<4x8x8xf32>
      %cst_48 = arith.constant dense<0.000000e+00> : vector<4x8xf32>
      %133 = vector.multi_reduction <add>, %132, %cst_48 [2] : vector<4x8x8xf32> to vector<4x8xf32>
      %134 = vector.shape_cast %133 : vector<4x8xf32> to vector<4x8x1xf32>
      %135 = tpu.reciprocal %134 {approx = true} : vector<4x8x1xf32> -> vector<4x8x1xf32>
      %136 = vector.broadcast %135 : vector<4x8x1xf32> to vector<4x8x8xf32>
      %137 = arith.mulf %132, %136 : vector<4x8x8xf32>
      %138 = arith.truncf %137 : vector<4x8x8xf32> to vector<4x8x8xbf16>
      %139 = arith.truncf %122 : vector<4x8x32xf32> to vector<4x8x32xbf16>
      "tpu.trace_start"() <{level = 10 : i32, message = "hts,hsd->htd"}> : () -> ()
      %cst_49 = arith.constant dense<0.000000e+00> : vector<4x8x32xf32>
      %140 = tpu.matmul %138, %139, %cst_49 {dimension_numbers = #tpu.dot_dimension_numbers<[2], [1], [1], [2], [0, 0, 0, 1, 1, 2], [0], [0]>} : vector<4x8x8xbf16>, vector<4x8x32xbf16>, vector<4x8x32xf32> -> vector<4x8x32xf32>
      "tpu.trace_stop"() : () -> ()
      %141 = vector.extract_strided_slice %140 {offsets = [0, 0, 0], sizes = [1, 8, 32], strides = [1, 1, 1]} : vector<4x8x32xf32> to vector<1x8x32xf32>
      %142 = vector.shape_cast %141 : vector<1x8x32xf32> to vector<8x32xf32>
      %143 = vector.extract_strided_slice %140 {offsets = [1, 0, 0], sizes = [1, 8, 32], strides = [1, 1, 1]} : vector<4x8x32xf32> to vector<1x8x32xf32>
      %144 = vector.shape_cast %143 : vector<1x8x32xf32> to vector<8x32xf32>
      %145 = vector.extract_strided_slice %140 {offsets = [2, 0, 0], sizes = [1, 8, 32], strides = [1, 1, 1]} : vector<4x8x32xf32> to vector<1x8x32xf32>
      %146 = vector.shape_cast %145 : vector<1x8x32xf32> to vector<8x32xf32>
      %147 = vector.extract_strided_slice %140 {offsets = [3, 0, 0], sizes = [1, 8, 32], strides = [1, 1, 1]} : vector<4x8x32xf32> to vector<1x8x32xf32>
      %148 = vector.shape_cast %147 : vector<1x8x32xf32> to vector<8x32xf32>
      %149 = tpu.concatenate %142, %144, %146, %148 in 1 : vector<8x32xf32>, vector<8x32xf32>, vector<8x32xf32>, vector<8x32xf32> -> vector<8x128xf32>
      %150 = arith.truncf %149 : vector<8x128xf32> to vector<8x128xbf16>
      %151 = arith.index_cast %arg23 : i32 to index
      %c0_50 = arith.constant 0 : index
      %c0_51 = arith.constant 0 : index
      %152 = vector.load %arg12[%151, %c0_50, %c0_51] : memref<2x128x128xbf16, #tpu.memory_space<vmem>>, vector<1x128x128xbf16>
      %153 = vector.shape_cast %152 : vector<1x128x128xbf16> to vector<128x128xbf16>
      %cst_52 = arith.constant dense<0.000000e+00> : vector<8x128xf32>
      %154 = tpu.matmul %150, %153, %cst_52 {dimension_numbers = #tpu.dot_dimension_numbers<[1], [0], [0], [1], [0, 0, 1, 1], [], []>} : vector<8x128xbf16>, vector<128x128xbf16>, vector<8x128xf32> -> vector<8x128xf32>
      %155 = arith.index_cast %arg23 : i32 to index
      %c0_53 = arith.constant 0 : index
      %c0_54 = arith.constant 0 : index
      %156 = vector.load %arg13[%155, %c0_53, %c0_54] : memref<2x1x128xf32, #tpu.memory_space<vmem>>, vector<1x1x128xf32>
      %157 = vector.shape_cast %156 : vector<1x1x128xf32> to vector<1x128xf32>
      %158 = vector.broadcast %157 : vector<1x128xf32> to vector<8x128xf32>
      %159 = arith.addf %154, %158 : vector<8x128xf32>
      %160 = arith.addf %arg24, %159 : vector<8x128xf32>
      %161 = arith.index_cast %arg23 : i32 to index
      %c0_55 = arith.constant 0 : index
      %c0_56 = arith.constant 0 : index
      %162 = vector.load %arg14[%161, %c0_55, %c0_56] : memref<2x1x128xf32, #tpu.memory_space<vmem>>, vector<1x1x128xf32>
      %163 = vector.shape_cast %162 : vector<1x1x128xf32> to vector<1x128xf32>
      %164 = arith.index_cast %arg23 : i32 to index
      %c0_57 = arith.constant 0 : index
      %c0_58 = arith.constant 0 : index
      %165 = vector.load %arg15[%164, %c0_57, %c0_58] : memref<2x1x128xf32, #tpu.memory_space<vmem>>, vector<1x1x128xf32>
      %166 = vector.shape_cast %165 : vector<1x1x128xf32> to vector<1x128xf32>
      %cst_59 = arith.constant dense<0.000000e+00> : vector<8xf32>
      %167 = vector.multi_reduction <add>, %160, %cst_59 [1] : vector<8x128xf32> to vector<8xf32>
      %168 = vector.shape_cast %167 : vector<8xf32> to vector<8x1xf32>
      %cst_60 = arith.constant 1.280000e+02 : f32
      %169 = vector.broadcast %cst_60 : f32 to vector<8x1xf32>
      %170 = arith.divf %168, %169 : vector<8x1xf32>
      %171 = vector.broadcast %170 : vector<8x1xf32> to vector<8x128xf32>
      %172 = arith.subf %160, %171 : vector<8x128xf32>
      %173 = arith.mulf %172, %172 : vector<8x128xf32>
      %cst_61 = arith.constant dense<0.000000e+00> : vector<8xf32>
      %174 = vector.multi_reduction <add>, %173, %cst_61 [1] : vector<8x128xf32> to vector<8xf32>
      %175 = vector.shape_cast %174 : vector<8xf32> to vector<8x1xf32>
      %cst_62 = arith.constant 1.280000e+02 : f32
      %176 = vector.broadcast %cst_62 : f32 to vector<8x1xf32>
      %177 = arith.divf %175, %176 : vector<8x1xf32>
      %cst_63 = arith.constant 9.99999974E-6 : f32
      %178 = vector.broadcast %cst_63 : f32 to vector<8x1xf32>
      %179 = arith.addf %177, %178 : vector<8x1xf32>
      %180 = math.rsqrt %179 : vector<8x1xf32>
      %181 = vector.broadcast %180 : vector<8x1xf32> to vector<8x128xf32>
      %182 = arith.mulf %172, %181 : vector<8x128xf32>
      %183 = vector.broadcast %163 : vector<1x128xf32> to vector<8x128xf32>
      %184 = arith.mulf %182, %183 : vector<8x128xf32>
      %185 = vector.broadcast %166 : vector<1x128xf32> to vector<8x128xf32>
      %186 = arith.addf %184, %185 : vector<8x128xf32>
      %187 = arith.truncf %186 : vector<8x128xf32> to vector<8x128xbf16>
      %188 = arith.index_cast %arg23 : i32 to index
      %c0_64 = arith.constant 0 : index
      %c0_65 = arith.constant 0 : index
      %189 = vector.load %arg16[%188, %c0_64, %c0_65] : memref<2x128x512xbf16, #tpu.memory_space<vmem>>, vector<1x128x512xbf16>
      %190 = vector.shape_cast %189 : vector<1x128x512xbf16> to vector<128x512xbf16>
      %cst_66 = arith.constant dense<0.000000e+00> : vector<8x512xf32>
      %191 = tpu.matmul %187, %190, %cst_66 {dimension_numbers = #tpu.dot_dimension_numbers<[1], [0], [0], [1], [0, 0, 1, 1], [], []>} : vector<8x128xbf16>, vector<128x512xbf16>, vector<8x512xf32> -> vector<8x512xf32>
      %192 = arith.index_cast %arg23 : i32 to index
      %c0_67 = arith.constant 0 : index
      %c0_68 = arith.constant 0 : index
      %193 = vector.load %arg17[%192, %c0_67, %c0_68] : memref<2x1x512xf32, #tpu.memory_space<vmem>>, vector<1x1x512xf32>
      %194 = vector.shape_cast %193 : vector<1x1x512xf32> to vector<1x512xf32>
      %195 = vector.broadcast %194 : vector<1x512xf32> to vector<8x512xf32>
      %196 = arith.addf %191, %195 : vector<8x512xf32>
      %cst_69 = arith.constant 5.000000e-01 : f32
      %197 = vector.broadcast %cst_69 : f32 to vector<8x512xf32>
      %198 = arith.mulf %197, %196 : vector<8x512xf32>
      %cst_70 = arith.constant 0.707106769 : f32
      %199 = vector.broadcast %cst_70 : f32 to vector<8x512xf32>
      %200 = arith.mulf %196, %199 : vector<8x512xf32>
      %201 = math.erf %200 : vector<8x512xf32>
      %cst_71 = arith.constant 1.000000e+00 : f32
      %202 = vector.broadcast %cst_71 : f32 to vector<8x512xf32>
      %203 = arith.addf %202, %201 : vector<8x512xf32>
      %204 = arith.mulf %198, %203 : vector<8x512xf32>
      %205 = arith.truncf %204 : vector<8x512xf32> to vector<8x512xbf16>
      %206 = arith.index_cast %arg23 : i32 to index
      %c0_72 = arith.constant 0 : index
      %c0_73 = arith.constant 0 : index
      %207 = vector.load %arg18[%206, %c0_72, %c0_73] : memref<2x512x128xbf16, #tpu.memory_space<vmem>>, vector<1x512x128xbf16>
      %208 = vector.shape_cast %207 : vector<1x512x128xbf16> to vector<512x128xbf16>
      %cst_74 = arith.constant dense<0.000000e+00> : vector<8x128xf32>
      %209 = tpu.matmul %205, %208, %cst_74 {dimension_numbers = #tpu.dot_dimension_numbers<[1], [0], [0], [1], [0, 0, 1, 1], [], []>} : vector<8x512xbf16>, vector<512x128xbf16>, vector<8x128xf32> -> vector<8x128xf32>
      %210 = arith.index_cast %arg23 : i32 to index
      %c0_75 = arith.constant 0 : index
      %c0_76 = arith.constant 0 : index
      %211 = vector.load %arg19[%210, %c0_75, %c0_76] : memref<2x1x128xf32, #tpu.memory_space<vmem>>, vector<1x1x128xf32>
      %212 = vector.shape_cast %211 : vector<1x1x128xf32> to vector<1x128xf32>
      %213 = vector.broadcast %212 : vector<1x128xf32> to vector<8x128xf32>
      %214 = arith.addf %209, %213 : vector<8x128xf32>
      %215 = arith.addf %160, %214 : vector<8x128xf32>
      scf.yield %215 : vector<8x128xf32>
    }
    %c2_i32_15 = arith.constant 2 : i32
    %cst_16 = arith.constant dense<0.000000e+00> : vector<8xf32>
    %22 = vector.multi_reduction <add>, %21, %cst_16 [1] : vector<8x128xf32> to vector<8xf32>
    %23 = vector.shape_cast %22 : vector<8xf32> to vector<8x1xf32>
    %cst_17 = arith.constant 1.280000e+02 : f32
    %24 = vector.broadcast %cst_17 : f32 to vector<8x1xf32>
    %25 = arith.divf %23, %24 : vector<8x1xf32>
    %26 = vector.broadcast %25 : vector<8x1xf32> to vector<8x128xf32>
    %27 = arith.subf %21, %26 : vector<8x128xf32>
    %28 = arith.mulf %27, %27 : vector<8x128xf32>
    %cst_18 = arith.constant dense<0.000000e+00> : vector<8xf32>
    %29 = vector.multi_reduction <add>, %28, %cst_18 [1] : vector<8x128xf32> to vector<8xf32>
    %30 = vector.shape_cast %29 : vector<8xf32> to vector<8x1xf32>
    %cst_19 = arith.constant 1.280000e+02 : f32
    %31 = vector.broadcast %cst_19 : f32 to vector<8x1xf32>
    %32 = arith.divf %30, %31 : vector<8x1xf32>
    %cst_20 = arith.constant 9.99999974E-6 : f32
    %33 = vector.broadcast %cst_20 : f32 to vector<8x1xf32>
    %34 = arith.addf %32, %33 : vector<8x1xf32>
    %35 = math.rsqrt %34 : vector<8x1xf32>
    %36 = vector.broadcast %35 : vector<8x1xf32> to vector<8x128xf32>
    %37 = arith.mulf %27, %36 : vector<8x128xf32>
    %38 = arith.truncf %37 : vector<8x128xf32> to vector<8x128xbf16>
    %c0_21 = arith.constant 0 : index
    %c0_22 = arith.constant 0 : index
    %39 = vector.load %arg20[%c0_21, %c0_22] : memref<128x128xbf16, #tpu.memory_space<vmem>>, vector<128x128xbf16>
    %cst_23 = arith.constant dense<0.000000e+00> : vector<8x128xf32>
    %40 = tpu.matmul %38, %39, %cst_23 {dimension_numbers = #tpu.dot_dimension_numbers<[1], [0], [0], [1], [0, 0, 1, 1], [], []>} : vector<8x128xbf16>, vector<128x128xbf16>, vector<8x128xf32> -> vector<8x128xf32>
    %c0_24 = arith.constant 0 : index
    %c0_25 = arith.constant 0 : index
    %41 = vector.load %arg21[%c0_24, %c0_25] : memref<1x128xf32, #tpu.memory_space<vmem>>, vector<1x128xf32>
    %42 = vector.broadcast %41 : vector<1x128xf32> to vector<8x128xf32>
    %43 = arith.addf %40, %42 : vector<8x128xf32>
    %44 = tpu.iota {dimensions = array<i32: 1>} : vector<8x128xi32>
    %cst_26 = arith.constant 0.000000e+00 : f32
    %45 = vector.broadcast %cst_26 : f32 to vector<8x128xf32>
    %46 = arith.subf %45, %43 : vector<8x128xf32>
    %47 = math.exp %46 : vector<8x128xf32>
    %cst_27 = arith.constant 1.000000e+00 : f32
    %48 = vector.broadcast %cst_27 : f32 to vector<8x128xf32>
    %49 = arith.addf %48, %47 : vector<8x128xf32>
    %50 = tpu.reciprocal %49 {approx = true} : vector<8x128xf32> -> vector<8x128xf32>
    %c33_i32 = arith.constant 33 : i32
    %51 = vector.broadcast %c33_i32 : i32 to vector<8x128xi32>
    %52 = arith.cmpi eq, %44, %51 : vector<8x128xi32>
    %53 = arith.select %52, %50, %43 : vector<8x128xi1>, vector<8x128xf32>
    %c0_28 = arith.constant 0 : index
    %c0_29 = arith.constant 0 : index
    %c0_30 = arith.constant 0 : index
    %54 = vector.load %arg22[%c0_28, %c0_29, %c0_30] : memref<1x8x128xf32, #tpu.memory_space<vmem>>, vector<1x8x128xf32>
    %55 = vector.shape_cast %54 : vector<1x8x128xf32> to vector<8x128xf32>
    %56 = vector.shape_cast %53 : vector<8x128xf32> to vector<1x8x128xf32>
    tpu.vector_store %arg22[%c0_28, %c0_29, %c0_30], %56 {strides = array<i32>} : memref<1x8x128xf32, #tpu.memory_space<vmem>>, vector<1x8x128xf32>,
    return
  }
  func.func @transform_0(%arg0: i32) -> (i32, i32, i32) {
    %c0_i32 = arith.constant 0 : i32
    %c0_i32_0 = arith.constant 0 : i32
    %c0_i32_1 = arith.constant 0 : i32
    return %arg0, %c0_i32, %c0_i32_0 : i32, i32, i32
  }
  func.func @transform_1(%arg0: i32) -> (i32, i32, i32) {
    %c0_i32 = arith.constant 0 : i32
    %c0_i32_0 = arith.constant 0 : i32
    %c0_i32_1 = arith.constant 0 : i32
    return %arg0, %c0_i32, %c0_i32_0 : i32, i32, i32
  }
  func.func @transform_2(%arg0: i32) -> (i32, i32) {
    %c0_i32 = arith.constant 0 : i32
    %c0_i32_0 = arith.constant 0 : i32
    %c0_i32_1 = arith.constant 0 : i32
    return %c0_i32, %c0_i32_0 : i32, i32
  }
  func.func @transform_3(%arg0: i32) -> (i32, i32) {
    %c0_i32 = arith.constant 0 : i32
    %c0_i32_0 = arith.constant 0 : i32
    %c0_i32_1 = arith.constant 0 : i32
    return %c0_i32, %c0_i32_0 : i32, i32
  }
  func.func @transform_4(%arg0: i32) -> (i32, i32) {
    %c0_i32 = arith.constant 0 : i32
    %c0_i32_0 = arith.constant 0 : i32
    %c0_i32_1 = arith.constant 0 : i32
    return %c0_i32, %c0_i32_0 : i32, i32
  }
  func.func @transform_5(%arg0: i32) -> (i32, i32) {
    %c0_i32 = arith.constant 0 : i32
    %c0_i32_0 = arith.constant 0 : i32
    %c0_i32_1 = arith.constant 0 : i32
    return %c0_i32, %c0_i32_0 : i32, i32
  }
  func.func @transform_6(%arg0: i32) -> (i32, i32) {
    %c0_i32 = arith.constant 0 : i32
    %c0_i32_0 = arith.constant 0 : i32
    %c0_i32_1 = arith.constant 0 : i32
    return %c0_i32, %c0_i32_0 : i32, i32
  }
  func.func @transform_7(%arg0: i32) -> (i32, i32, i32) {
    %c0_i32 = arith.constant 0 : i32
    %c0_i32_0 = arith.constant 0 : i32
    %c0_i32_1 = arith.constant 0 : i32
    %c0_i32_2 = arith.constant 0 : i32
    return %c0_i32, %c0_i32_0, %c0_i32_1 : i32, i32, i32
  }
  func.func @transform_8(%arg0: i32) -> (i32, i32, i32) {
    %c0_i32 = arith.constant 0 : i32
    %c0_i32_0 = arith.constant 0 : i32
    %c0_i32_1 = arith.constant 0 : i32
    %c0_i32_2 = arith.constant 0 : i32
    return %c0_i32, %c0_i32_0, %c0_i32_1 : i32, i32, i32
  }
  func.func @transform_9(%arg0: i32) -> (i32, i32, i32) {
    %c0_i32 = arith.constant 0 : i32
    %c0_i32_0 = arith.constant 0 : i32
    %c0_i32_1 = arith.constant 0 : i32
    %c0_i32_2 = arith.constant 0 : i32
    return %c0_i32, %c0_i32_0, %c0_i32_1 : i32, i32, i32
  }
  func.func @transform_10(%arg0: i32) -> (i32, i32, i32) {
    %c0_i32 = arith.constant 0 : i32
    %c0_i32_0 = arith.constant 0 : i32
    %c0_i32_1 = arith.constant 0 : i32
    %c0_i32_2 = arith.constant 0 : i32
    return %c0_i32, %c0_i32_0, %c0_i32_1 : i32, i32, i32
  }
  func.func @transform_11(%arg0: i32) -> (i32, i32, i32) {
    %c0_i32 = arith.constant 0 : i32
    %c0_i32_0 = arith.constant 0 : i32
    %c0_i32_1 = arith.constant 0 : i32
    %c0_i32_2 = arith.constant 0 : i32
    return %c0_i32, %c0_i32_0, %c0_i32_1 : i32, i32, i32
  }
  func.func @transform_12(%arg0: i32) -> (i32, i32, i32) {
    %c0_i32 = arith.constant 0 : i32
    %c0_i32_0 = arith.constant 0 : i32
    %c0_i32_1 = arith.constant 0 : i32
    %c0_i32_2 = arith.constant 0 : i32
    return %c0_i32, %c0_i32_0, %c0_i32_1 : i32, i32, i32
  }
  func.func @transform_13(%arg0: i32) -> (i32, i32, i32) {
    %c0_i32 = arith.constant 0 : i32
    %c0_i32_0 = arith.constant 0 : i32
    %c0_i32_1 = arith.constant 0 : i32
    %c0_i32_2 = arith.constant 0 : i32
    return %c0_i32, %c0_i32_0, %c0_i32_1 : i32, i32, i32
  }
  func.func @transform_14(%arg0: i32) -> (i32, i32, i32) {
    %c0_i32 = arith.constant 0 : i32
    %c0_i32_0 = arith.constant 0 : i32
    %c0_i32_1 = arith.constant 0 : i32
    %c0_i32_2 = arith.constant 0 : i32
    return %c0_i32, %c0_i32_0, %c0_i32_1 : i32, i32, i32
  }
  func.func @transform_15(%arg0: i32) -> (i32, i32, i32) {
    %c0_i32 = arith.constant 0 : i32
    %c0_i32_0 = arith.constant 0 : i32
    %c0_i32_1 = arith.constant 0 : i32
    %c0_i32_2 = arith.constant 0 : i32
    return %c0_i32, %c0_i32_0, %c0_i32_1 : i32, i32, i32
  }
  func.func @transform_16(%arg0: i32) -> (i32, i32, i32) {
    %c0_i32 = arith.constant 0 : i32
    %c0_i32_0 = arith.constant 0 : i32
    %c0_i32_1 = arith.constant 0 : i32
    %c0_i32_2 = arith.constant 0 : i32
    return %c0_i32, %c0_i32_0, %c0_i32_1 : i32, i32, i32
  }
  func.func @transform_17(%arg0: i32) -> (i32, i32, i32) {
    %c0_i32 = arith.constant 0 : i32
    %c0_i32_0 = arith.constant 0 : i32
    %c0_i32_1 = arith.constant 0 : i32
    %c0_i32_2 = arith.constant 0 : i32
    return %c0_i32, %c0_i32_0, %c0_i32_1 : i32, i32, i32
  }
  func.func @transform_18(%arg0: i32) -> (i32, i32, i32) {
    %c0_i32 = arith.constant 0 : i32
    %c0_i32_0 = arith.constant 0 : i32
    %c0_i32_1 = arith.constant 0 : i32
    %c0_i32_2 = arith.constant 0 : i32
    return %c0_i32, %c0_i32_0, %c0_i32_1 : i32, i32, i32
  }
  func.func @transform_19(%arg0: i32) -> (i32, i32) {
    %c0_i32 = arith.constant 0 : i32
    %c0_i32_0 = arith.constant 0 : i32
    %c0_i32_1 = arith.constant 0 : i32
    return %c0_i32, %c0_i32_0 : i32, i32
  }
  func.func @transform_20(%arg0: i32) -> (i32, i32) {
    %c0_i32 = arith.constant 0 : i32
    %c0_i32_0 = arith.constant 0 : i32
    %c0_i32_1 = arith.constant 0 : i32
    return %c0_i32, %c0_i32_0 : i32, i32
  }
  func.func @transform_21(%arg0: i32) -> (i32, i32, i32) {
    %c0_i32 = arith.constant 0 : i32
    %c0_i32_0 = arith.constant 0 : i32
    %c0_i32_1 = arith.constant 0 : i32
    return %arg0, %c0_i32, %c0_i32_0 : i32, i32, i32
  }
}

</mosaic_0001>

<bundles_post_ra>
// kernel: world_model_forward.1
= control target key start
LH: loop header
LB: loop body
LE: loop exit
PB: predicated region body
PF: predicated region fallthrough
CT: control target
= control target key end

     0   :  { %s3658_s0 = inlined_call_operand.vmem [shape: f32[2,8,32], index: 0, kind: input, shape index: {}]   ;;  %s3659_s1 = inlined_call_operand.vmem [shape: f32[2,8,1], index: 1, kind: input, shape index: {}]   ;;  %s3660_s2 = inlined_call_operand.vmem [shape: bf16[32,128], index: 2, kind: input, shape index: {}]   ;;  %s3661_s3 = inlined_call_operand.vmem [shape: f32[1,128], index: 3, kind: input, shape index: {}]   ;;  %s3662_s4 = inlined_call_operand.vmem [shape: f32[1,128], index: 4, kind: input, shape index: {}]   ;;  %s3663_s5 = inlined_call_operand.vmem [shape: f32[1,128], index: 5, kind: input, shape index: {}]   ;;  %s3664_s6 = inlined_call_operand.vmem [shape: f32[8,128], index: 6, kind: input, shape index: {}]   ;;  %s3665_s7 = inlined_call_operand.vmem [shape: f32[2,1,128], index: 7, kind: input, shape index: {}]   ;;  %s3666_s8 = inlined_call_operand.vmem [shape: f32[2,1,128], index: 8, kind: input, shape index: {}]   ;;  %s3667_s9 = inlined_call_operand.vmem [shape: bf16[2,128,384], index: 9, kind: input, shape index: {}]   ;;  %s3668_s10 = inlined_call_operand.vmem [shape: f32[2,1,384], index: 10, kind: input, shape index: {}]   ;;  %s3669_s11 = inlined_call_operand.vmem [shape: bf16[2,128,128], index: 11, kind: input, shape index: {}]   ;;  %s3670_s12 = inlined_call_operand.vmem [shape: f32[2,1,128], index: 12, kind: input, shape index: {}]   ;;  %s3671_s13 = inlined_call_operand.vmem [shape: f32[2,1,128], index: 13, kind: input, shape index: {}]   ;;  %s3672_s14 = inlined_call_operand.vmem [shape: f32[2,1,128], index: 14, kind: input, shape index: {}]   ;;  %s3673_s15 = inlined_call_operand.vmem [shape: bf16[2,128,512], index: 15, kind: input, shape index: {}]   ;;  %s3674_s16 = inlined_call_operand.vmem [shape: f32[2,1,512], index: 16, kind: input, shape index: {}]   ;;  %s3675_s17 = inlined_call_operand.vmem [shape: bf16[2,512,128], index: 17, kind: input, shape index: {}]   ;;  %s3676_s18 = inlined_call_operand.vmem [shape: f32[2,1,128], index: 18, kind: input, shape index: {}]   ;;  %s3677_s19 = inlined_call_operand.vmem [shape: bf16[128,128], index: 19, kind: input, shape index: {}]   ;;  %s3678_s20 = inlined_call_operand.vmem [shape: f32[1,128], index: 20, kind: input, shape index: {}]   ;;  %s3679_s21 = inlined_call_operand.vmem [shape: f32[2,8,128], index: 21, kind: output, shape index: {}]  }
   0x1   :  { %3682 = sst [smem:[#allocation2_spill]] %s3658_s0 }
   0x2   :  { %3683 = sst [smem:[#allocation3_spill]] %s3659_s1 }
   0x3   :  { %3684 = sst [smem:[#allocation4_spill]] %s3660_s2  ;;  %s3283_s2 = smov 0  }
   0x4   :  { %3685 = sst [smem:[#allocation5_spill]] %s3661_s3 }
   0x5   :  { %3686 = sst [smem:[#allocation6_spill]] %s3662_s4 }
   0x6   :  { %3687 = sst [smem:[#allocation7_spill]] %s3663_s5 }
   0x7 LB: > { %s2590_s25 = sadd.s32 4294967295, %s3154_s2   ;;  %p2594_p0 = scmp.ge.s32.totalorder %s3154_s2, 1  ;;  %s3154_s2 = sphi %s3283_s2, %s31_s2  }
   0x8   : > { %p595_p1 = scmp.lt.s32.totalorder %s3154_s2, 3 }
   0xa   : > { %p596_p2 = pnand %p2594_p0, %p595_p1 }
   0xb   : > { %s3688_s3 = sld [smem:[#allocation4_spill]] (!%p596_p2)  ;;  %v3164_v1 = vmov (!%p596_p2), 0.0   ;;  %vm3165_vm0 = vmmov (!%p596_p2), 0   ;;  %p657_p3 = scmp.lt.s32.totalorder (!%p596_p2), %s2590_s25, 1  ;;  %v3166_v3 = vmov (!%p596_p2), 0   ;;  %vm696_vm1 = vcmask (!%p596_p2), 261120  }
   0xc   : > { %599 = sbr.rel (%p596_p2) target bundleno = 3349 (0xd15), region = 104  ;;  %2826 = vmatprep.subr.bf16.mxu0 (!%p596_p2), %v3164_v1  ;;  %2830 = vmatprep.mubr.msk.bf16.mxu0 (!%p596_p2), %vm3165_vm0, %v3164_v1  ;;  %s3689_s5 = sld [smem:[#allocation2_spill]] (!%p596_p2)  ;;  %v762_v18 = vld [vmem:[%s3664_s6] sm:$0xff] (!%p596_p2) }
   0xd   : > { %2975 = vset.pattern.permute.xlu0 (!%p596_p2), %v3166_v3  ;;  %s3690_s28 = sld [smem:[#allocation3_spill]] (!%p596_p2)  ;;  %s3691_s30 = sld [smem:[#allocation6_spill]] (!%p596_p2) }
   0xe   : > { %s3692_s23 = sld [smem:[#allocation5_spill]] (!%p596_p2)  ;;  %s3693_s26 = sld [smem:[#allocation7_spill]] (!%p596_p2) }
  0x11   : > { %v2976_v0 = vld [vmem:[%s3688_s3] sm:$0xff] (!%p596_p2)   ;;  %v2977_v2 = vld [vmem:[%s3688_s3 + $0x8] sm:$0xff] (!%p596_p2)   ;;  %s3330_s3 = smov (!%p596_p2), 0  }
  0x12   : > { %2827 = vmatpush3.bf16.msra.mxu0 (!%p596_p2), %v2976_v0 }
  0x13   : > { %2828 = vmatprep.subr.bf16.mxu0 %v3164_v1  ;;  %s3696_s25 = smov (!%p657_p3, %s2590_s25), 1  ;;  %v2602_v7 = vld [vmem:[%s3691_s30] ss:$0 sm:$0xff] }
  0x14   : > { %s3301_s0 = sshll.u32 %s3696_s25, 3  ;;  %v2598_v9 = vld [vmem:[%s3692_s23] ss:$0 sm:$0xff] }
  0x15   : > { %s660_s22 = scalar_lea.vmem %s3689_s5, %s3301_s0  ;;  %s668_s24 = scalar_lea.vmem %s3679_s21, %s3301_s0  ;;  %v2603_v14 = vld [vmem:[%s3693_s26] ss:$0 sm:$0xff] }
  0x16   : > { %2829 = vmatpush3.bf16.msra.mxu0 %v2977_v2  ;;  %v670_v4 = vld [vmem:[%s660_s22] sm:$0xff]  ;;  %s664_s29 = scalar_lea.vmem %s3690_s28, %s3301_s0 }
  0x17   : > { %v672_v5 = vpack.c.bf16 %v670_v4, %v670_v4  ;;  %v671_v6 = vld [vmem:[%s664_s29] sm:$0xff] }
  0x18   : > { %743 = vperm.xlu0 %2975, %v671_v6  }
  0x19   : > { %2831 = vmatmul.mubr.msk.bf16.vlgmr.msra.gmra.mrb[0].mxu0 %vm696_vm1, %v672_v5 }
  0x97   : > { %v744_v8 = vpop.permute.xlu0 %743 }
  0x98   : > { %v752_v10 = vmul.f32 %v2602_v7, %v744_v8 }
  0xec   : > { %v734_v11 = vpop.f32.mrb[0].mxu0 }
  0xed   : > { %v735_v12 = vadd.f32 %v2598_v9, %v734_v11  ;;  %v2832_v13 = vpop.f32.mrb[1].mxu0 }
  0xee   : > { %v737_v15 = vpop.f32.mrb[2].mxu0 }
  0xef   : > { %v753_v16 = vadd.f32 %v752_v10, %v735_v12  ;;  %v2833_v17 = vpop.f32.mrb[3].mxu0 }
  0xf1   : > { %v761_v19 = vadd.f32 %v2603_v14, %v753_v16 }
  0xf3   : > { %v763_v20 = vadd.f32 %v762_v18, %v761_v19  }
  0xf4 LB: >> { %775 = vadd.xlane.f32.xlu0 %v3158_v20  ;;  %v3167_v21 = vmov 0.0   ;;  %s2732_s29 = smul.u32 192, %s3162_s3  ;;  %v3168_v45 = vmov 0   ;;  %vm3169_vm2 = vmmov 0   ;;  %s771_s22 = scalar_lea.vmem %s3665_s7, %s3162_s3  ;;  %v841_v61 = vlaneseq  ;;  %s3162_s3 = sphi %s3330_s3, %s769_s3   ;;  %v3158_v20 = vphi %v763_v20, %v3694_v20  }
  0xf5   : >> { %2834 = vmatprep.subr.bf16.mxu1 %v3167_v21  ;;  %1016 = vmatprep.mubr.bf16.mxu0 %v3168_v45  ;;  %s773_s27 = scalar_lea.vmem %s3666_s8, %s3162_s3  ;;  %v2604_v55 = vld [vmem:[%s771_s22] ss:$0 sm:$0xff]  ;;  %s837_s28 = smul.u32 3, %s3162_s3  ;;  %vm1347_vm3 = vcmask 1043456   ;;  %vm1291_vm4 = vcmask 64512   ;;  %vm1542_vm5 = vcmask 523264  }
  0xf6   : >> { %s3344_s30 = scalar_lea.vmem %s3667_s9, %s2732_s29  ;;  %2850 = vmatprep.mubr.msk.bf16.mxu1 %vm3169_vm2, %v3167_v21  ;;  %v2605_v57 = vld [vmem:[%s773_s27] ss:$0 sm:$0xff]  ;;  %v3397_v62 = vshrl.u32 %v841_v61, 7  ;;  %s3171_s5 = smov 96   ;;  %vm1544_vm6 = vcmask 785408  }
  0xf7   : >> { %v2978_v22 = vld [vmem:[%s3344_s30 + $0x4] ss:$12 sps:$4 sm:$0xff]   ;;  %v2980_v23 = vld [vmem:[%s3344_s30] ss:$12 sps:$4 sm:$0xff]   ;;  %v2981_v24 = vld [vmem:[%s3344_s30 + $0x8] ss:$12 sps:$4 sm:$0xff]   ;;  %s838_s4 = scalar_lea.vmem %s3668_s10, %s837_s28  ;;  %s1566_s25 = scalar_lea.vmem %s3670_s12, %s3162_s3 }
  0xf8   : >> { %984 = vmatprep.subr.bf16.mxu0 %v2978_v22  ;;  %v2982_v25 = vld [vmem:[%s3344_s30 + $0x1c] ss:$12 sps:$4 sm:$0xff]   ;;  %v2984_v26 = vld [vmem:[%s3344_s30 + $0x18] ss:$12 sps:$4 sm:$0xff]   ;;  %2835 = vmatpush3.bf16.msra.mxu1 %v2981_v24  ;;  %v2985_v27 = vld [vmem:[%s3344_s30 + $0x20] ss:$12 sps:$4 sm:$0xff]   ;;  %s1663_s29 = scalar_lea.vmem %s3671_s13, %s3162_s3  ;;  %s2084_s28 = scalar_lea.vmem %s3676_s18, %s3162_s3 }
  0xf9   : >> { %985 = vmatpush1.bf16.msra.mxu0 %v2980_v23  ;;  %2836 = vmatprep.subr.bf16.mxu1 %v3167_v21  ;;  %v2986_v28 = vld [vmem:[%s3344_s30 + $0x34] ss:$12 sps:$4 sm:$0xff]   ;;  %v2988_v33 = vld [vmem:[%s3344_s30 + $0x30] ss:$12 sps:$4 sm:$0xff]   ;;  %v2989_v34 = vld [vmem:[%s3344_s30 + $0x38] ss:$12 sps:$4 sm:$0xff]  }
  0xfa   : >> { %986 = vmatprep.subr.bf16.mxu0 %v2982_v25  ;;  %v2990_v35 = vld [vmem:[%s3344_s30 + $0x4c] ss:$12 sps:$4 sm:$0xff]   ;;  %v2992_v36 = vld [vmem:[%s3344_s30 + $0x48] ss:$12 sps:$4 sm:$0xff]   ;;  %v2993_v37 = vld [vmem:[%s3344_s30 + $0x50] ss:$12 sps:$4 sm:$0xff]  }
  0xfb   : >> { %v2994_v38 = vld [vmem:[%s3344_s30 + $0x64] ss:$12 sps:$4 sm:$0xff]   ;;  %v2996_v39 = vld [vmem:[%s3344_s30 + $0x60] ss:$12 sps:$4 sm:$0xff]   ;;  %v2997_v40 = vld [vmem:[%s3344_s30 + $0x68] ss:$12 sps:$4 sm:$0xff]  }
  0xfc   : >> { %2837 = vmatpush3.bf16.msra.mxu1 %v2985_v27  ;;  %v2998_v41 = vld [vmem:[%s3344_s30 + $0x7c] ss:$12 sps:$4 sm:$0xff]   ;;  %v3000_v42 = vld [vmem:[%s3344_s30 + $0x78] ss:$12 sps:$4 sm:$0xff]   ;;  %v3001_v43 = vld [vmem:[%s3344_s30 + $0x80] ss:$12 sps:$4 sm:$0xff]  }
  0xfd   : >> { %987 = vmatpush1.bf16.msra.mxu0 %v2984_v26  ;;  %2838 = vmatprep.subr.bf16.mxu1 %v3167_v21  ;;  %v3002_v44 = vld [vmem:[%s3344_s30 + $0x94] ss:$12 sps:$4 sm:$0xff]   ;;  %v3004_v46 = vld [vmem:[%s3344_s30 + $0x90] ss:$12 sps:$4 sm:$0xff]   ;;  %v3005_v47 = vld [vmem:[%s3344_s30 + $0x98] ss:$12 sps:$4 sm:$0xff]  }
  0xfe   : >> { %988 = vmatprep.subr.bf16.mxu0 %v2986_v28  ;;  %v3006_v48 = vld [vmem:[%s3344_s30 + $0xac] ss:$12 sps:$4 sm:$0xff]   ;;  %v3008_v49 = vld [vmem:[%s3344_s30 + $0xa8] ss:$12 sps:$4 sm:$0xff]   ;;  %v3009_v50 = vld [vmem:[%s3344_s30 + $0xb0] ss:$12 sps:$4 sm:$0xff]  }
  0xff   : >> { %v851_v63 = vsub.s32 2, %v3397_v62  ;;  %v839_v0 = vld [vmem:[%s838_s4] sm:$0x7]  ;;  %v847_v2 = vsub.s32 1, %v3397_v62  ;;  %v843_v4 = vsub.s32 0, %v3397_v62  ;;  %s3170_s30 = smov 64  }
 0x100   : >> { %2839 = vmatpush3.bf16.msra.mxu1 %v2989_v34  ;;  %s3172_s23 = smov 32   ;;  %s2733_s22 = sshll.u32 %s3162_s3, 6 }
 0x101   : >> { %989 = vmatpush1.bf16.msra.mxu0 %v2988_v33  ;;  %2840 = vmatprep.subr.bf16.mxu1 %v3167_v21  ;;  %v852_v3 = vrot.slane %v839_v0, %v851_v63  ;;  %v848_v5 = vrot.slane %v839_v0, %v847_v2  ;;  %v844_v11 = vrot.slane %v839_v0, %v843_v4  ;;  %s3477_s27 = scalar_lea.vmem %s3669_s11, %s2733_s22  ;;  %s2734_s4 = sshll.u32 %s3162_s3, 8 }
 0x102   : >> { %990 = vmatprep.subr.bf16.mxu0 %v2990_v35  ;;  %s3528_s26 = scalar_lea.vmem %s3675_s17, %s2734_s4 }
 0x104   : >> { %2841 = vmatpush3.bf16.msra.mxu1 %v2993_v37 }
 0x105   : >> { %991 = vmatpush1.bf16.msra.mxu0 %v2992_v36  ;;  %2842 = vmatprep.subr.bf16.mxu1 %v3167_v21 }
 0x106   : >> { %992 = vmatprep.subr.bf16.mxu0 %v2994_v38 }
 0x108   : >> { %2843 = vmatpush3.bf16.msra.mxu1 %v2997_v40 }
 0x109   : >> { %993 = vmatpush1.bf16.msra.mxu0 %v2996_v39  ;;  %2844 = vmatprep.subr.bf16.mxu1 %v3167_v21 }
 0x10a   : >> { %994 = vmatprep.subr.bf16.mxu0 %v2998_v41 }
 0x10c   : >> { %2845 = vmatpush3.bf16.msra.mxu1 %v3001_v43 }
 0x10d   : >> { %995 = vmatpush1.bf16.msra.mxu0 %v3000_v42  ;;  %2846 = vmatprep.subr.bf16.mxu1 %v3167_v21 }
 0x10e   : >> { %996 = vmatprep.subr.bf16.mxu0 %v3002_v44 }
 0x110   : >> { %2847 = vmatpush3.bf16.msra.mxu1 %v3005_v47 }
 0x111   : >> { %997 = vmatpush1.bf16.msra.mxu0 %v3004_v46  ;;  %2848 = vmatprep.subr.bf16.mxu1 %v3167_v21 }
 0x112   : >> { %998 = vmatprep.subr.bf16.mxu0 %v3006_v48 }
 0x114   : >> { %2849 = vmatpush3.bf16.msra.mxu1 %v3009_v50 }
 0x115   : >> { %999 = vmatpush1.bf16.msra.mxu0 %v3008_v49  ;;  %2854 = vmatprep.subr.bf16.mxu1 %v3167_v21 }
 0x116   : >> { %2878 = vmatprep.subr.bf16.mxu0 %v3167_v21 }
 0x181   : >> { %v776_v29 = vpop.xlane.xlu0 %775 }
 0x182   : >> { %v778_v30 = vmul.f32 0.0078125, %v776_v29 }
 0x184   : >> { %v779_v31 = vsub.f32 %v3158_v20, %v778_v30 }
 0x186   : >> { %v780_v32 = vmul.f32 %v779_v31, %v779_v31 }
 0x188   : >> { %781 = vadd.xlane.f32.xlu0 %v780_v32 }
 0x215   : >> { %v782_v51 = vpop.xlane.xlu0 %781 }
 0x216   : >> { %v783_v52 = vmul.f32 0.0078125, %v782_v51 }
 0x218   : >> { %v784_v53 = vadd.f32 1e-05, %v783_v52 }
 0x21a   : >> { %3098 = vrsqrt.f32 %v784_v53 }
 0x224   : >> { %v3099_v54 = vpop.eup %3098 }
 0x225   : >> { %v786_v56 = vmul.f32 %v3099_v54, %v779_v31 }
 0x227   : >> { %v793_v58 = vmul.f32 %v2604_v55, %v786_v56 }
 0x229   : >> { %v800_v59 = vadd.f32 %v2605_v57, %v793_v58 }
 0x22b   : >> { %v801_v60 = vpack.c.bf16 %v800_v59, %v800_v59 }
 0x22d   : >> { %1017 = vmatmul.mubr.bf16.vlgmr.msra.gmra.mrb[0].mxu0 %v801_v60  ;;  %2851 = vmatmul.mubr.bf16.vlgmr.msra.gmra.mrb[0].mxu1 %v801_v60 }
 0x22e   : >> { %2856 = vmatprep.mubr.msk.bf16.mxu1 %vm3169_vm2, %v3167_v21  ;;  %2880 = vmatprep.mubr.msk.bf16.mxu0 %vm3169_vm2, %v3167_v21 }
 0x300   : >> { %v1018_v6 = vpop.f32.mrb[0].mxu0  ;;  %v1059_v7 = vpop.f32.mrb[0].mxu1 }
 0x301   : >> { %v3409_v8 = vadd.f32 %v1059_v7, %v852_v3  ;;  %v1020_v9 = vpop.f32.mrb[1].mxu0  ;;  %v2852_v10 = vpop.f32.mrb[1].mxu1  ;;  %v1019_v22 = vadd.f32 %v1018_v6, %v844_v11 }
 0x302   : >> { %v1021_v12 = vadd.f32 %v1020_v9, %v848_v5  ;;  %v1022_v13 = vpop.f32.mrb[2].mxu0  ;;  %v1062_v14 = vpop.f32.mrb[2].mxu1 }
 0x303   : >> { %v1023_v15 = vpop.f32.mrb[3].mxu0  ;;  %v2853_v16 = vpop.f32.mrb[3].mxu1  ;;  %v1340_v17 = vpack.c.bf16 %v3409_v8, %v3409_v8  ;;  %v1095_v24 = vpack.c.bf16 %v1019_v22, %v1019_v22 }
 0x304   : >> { %1079 = vrot.lane.b32.xlu0 %v1021_v12, %s3170_s30  ;;  %1076 = vrot.lane.b32.xlu1 %v1021_v12, %s3171_s5  ;;  %v1099_v18 = vpack.c.bf16 %v1021_v12, %v1021_v12 }
 0x305   : >> { %v1349_v19 = vsel %vm1347_vm3, %v1340_v17, 0 }
 0x306   : >> { %2879 = vmatpush3.bf16.msra.mxu0 %v1349_v19  ;;  %v1107_v23 = vsel %vm696_vm1, %v1099_v18, 0 }
 0x307   : >> { %2855 = vmatpush3.bf16.xpose.msra.mxu1 %v1107_v23  ;;  %2890 = vmatprep.subr.bf16.mxu0 %v3167_v21 }
 0x308   : >> { %1066 = vrot.lane.b32.xlu1 %v1019_v22, %s3171_s5  ;;  %2860 = vmatprep.subr.bf16.mxu1 %v3167_v21 }
 0x30c   : >> { %1069 = vrot.lane.b32.xlu1 %v1019_v22, %s3170_s30 }
 0x30e   : >> { %2857 = vmatmul.mubr.msk.bf16.vlgmr.msra.gmra.mrb[4].mxu1 %vm696_vm1, %v1095_v24 }
 0x30f   : >> { %2862 = vmatprep.mubr.msk.bf16.mxu1 %vm3169_vm2, %v3167_v21 }
 0x310   : >> { %1082 = vrot.lane.b32.xlu1 %v1021_v12, %s3172_s23 }
 0x314   : >> { %1072 = vrot.lane.b32.xlu1 %v1019_v22, %s3172_s23 }
 0x376   : >> { %v1077_v25 = vpop.permute.xlu1 %1076  ;;  %v1080_v28 = vpop.permute.xlu0 %1079 }
 0x377   : >> { %v1100_v26 = vpack.c.bf16 %v1077_v25, %v1077_v25  ;;  %v1101_v30 = vpack.c.bf16 %v1080_v28, %v1080_v28 }
 0x379   : >> { %v1153_v27 = vsel %vm696_vm1, %v1100_v26, 0  ;;  %v1199_v33 = vsel %vm696_vm1, %v1101_v30, 0 }
 0x37a   : >> { %v1067_v29 = vpop.permute.xlu1 %1066  ;;  %2861 = vmatpush3.bf16.xpose.msra.mxu1 %v1153_v27 }
 0x37b   : >> { %2866 = vmatprep.subr.bf16.mxu1 %v3167_v21  ;;  %v1096_v32 = vpack.c.bf16 %v1067_v29, %v1067_v29 }
 0x37e   : >> { %v1070_v31 = vpop.permute.xlu1 %1069 }
 0x37f   : >> { %v1097_v36 = vpack.c.bf16 %v1070_v31, %v1070_v31 }
 0x381   : >> { %2863 = vmatmul.mubr.msk.bf16.vlgmr.msra.gmra.mrb[8].mxu1 %vm696_vm1, %v1096_v32 }
 0x382   : >> { %v1083_v34 = vpop.permute.xlu1 %1082  ;;  %2867 = vmatpush3.bf16.xpose.msra.mxu1 %v1199_v33  ;;  %2868 = vmatprep.mubr.msk.bf16.mxu1 %vm3169_vm2, %v3167_v21 }
 0x383   : >> { %2872 = vmatprep.subr.bf16.mxu1 %v3167_v21  ;;  %v1102_v35 = vpack.c.bf16 %v1083_v34, %v1083_v34 }
 0x385   : >> { %v1245_v37 = vsel %vm696_vm1, %v1102_v35, 0 }
 0x386   : >> { %v1073_v38 = vpop.permute.xlu1 %1072 }
 0x387   : >> { %v1098_v39 = vpack.c.bf16 %v1073_v38, %v1073_v38 }
 0x389   : >> { %2869 = vmatmul.mubr.msk.bf16.vlgmr.msra.gmra.mrb[12].mxu1 %vm696_vm1, %v1097_v36 }
 0x38a   : >> { %2873 = vmatpush3.bf16.xpose.msra.mxu1 %v1245_v37  ;;  %2874 = vmatprep.mubr.msk.bf16.mxu1 %vm3169_vm2, %v3167_v21 }
 0x38b   : >> { %2884 = vmatprep.subr.bf16.mxu1 %v3167_v21 }
 0x391   : >> { %2875 = vmatmul.mubr.msk.bf16.vlgmr.msra.gmra.mrb[16].mxu1 %vm696_vm1, %v1098_v39 }
 0x392   : >> { %2886 = vmatprep.mubr.msk.bf16.mxu1 %vm3169_vm2, %v3167_v21 }
 0x3e1   : >> { %v1143_v40 = vpop.f32.mrb[4].mxu1 }
 0x3e2   : >> { %v1287_v41 = vmul.f32 0.17677669, %v1143_v40  ;;  %v2858_v42 = vpop.f32.mrb[5].mxu1 }
 0x3e3   : >> { %v1146_v43 = vpop.f32.mrb[6].mxu1 }
 0x3e4   : >> { %v2859_v44 = vpop.f32.mrb[7].mxu1  ;;  %v1292_v46 = vsel %vm1291_vm4, %v1287_v41, -inf }
 0x3e5   : >> { %1293 = vmax.xlane.f32.xlu1 %v1292_v46 }
 0x454   : >> { %v1189_v47 = vpop.f32.mrb[8].mxu1 }
 0x455   : >> { %v1288_v48 = vmul.f32 0.17677669, %v1189_v47  ;;  %v2864_v49 = vpop.f32.mrb[9].mxu1 }
 0x456   : >> { %v1192_v50 = vpop.f32.mrb[10].mxu1 }
 0x457   : >> { %v2865_v51 = vpop.f32.mrb[11].mxu1  ;;  %v1295_v52 = vsel %vm1291_vm4, %v1288_v48, -inf }
 0x458   : >> { %1296 = vmax.xlane.f32.xlu0 %v1295_v52 }
 0x45c   : >> { %v1235_v53 = vpop.f32.mrb[12].mxu1 }
 0x45d   : >> { %v1289_v54 = vmul.f32 0.17677669, %v1235_v53  ;;  %v2870_v55 = vpop.f32.mrb[13].mxu1 }
 0x45e   : >> { %v1238_v56 = vpop.f32.mrb[14].mxu1 }
 0x45f   : >> { %v2871_v57 = vpop.f32.mrb[15].mxu1  ;;  %v1298_v58 = vsel %vm1291_vm4, %v1289_v54, -inf }
 0x460   : >> { %1299 = vmax.xlane.f32.xlu1 %v1298_v58 }
 0x464   : >> { %v1281_v59 = vpop.f32.mrb[16].mxu1 }
 0x465   : >> { %v1290_v60 = vmul.f32 0.17677669, %v1281_v59  ;;  %v2876_v0 = vpop.f32.mrb[17].mxu1  ;;  %v3010_v59 = vld [vmem:[%s3477_s27] sm:$0xff]  }
 0x466   : >> { %v1284_v3 = vpop.f32.mrb[18].mxu1 }
 0x467   : >> { %v2877_v5 = vpop.f32.mrb[19].mxu1  ;;  %v1301_v6 = vsel %vm1291_vm4, %v1290_v60, -inf }
 0x468   : >> { %1302 = vmax.xlane.f32.xlu1 %v1301_v6  ;;  %v3012_v5 = vld [vmem:[%s3477_s27 + $0x10] sm:$0xff]  }
 0x472   : >> { %v1294_v7 = vpop.xlane.xlu1 %1293 }
 0x473   : >> { %v1304_v9 = vsub.f32 %v1287_v41, %v1294_v7 }
 0x475   : >> { %v1308_v10 = vmul.f32 1.442695, %v1304_v9 }
 0x477   : >> { %3100 = vpow2.f32 %v1308_v10  ;;  %v3013_v10 = vld [vmem:[%s3477_s27 + $0x18] sm:$0xff]  }
 0x481   : >> { %v3101_v11 = vpop.eup %3100 }
 0x482   : >> { %v1316_v12 = vsel %vm1291_vm4, %v3101_v11, 0.0 }
 0x483   : >> { %1317 = vadd.xlane.f32.xlu0 %v1316_v12 }
 0x4e5   : >> { %v1297_v13 = vpop.xlane.xlu0 %1296 }
 0x4e6   : >> { %v1305_v14 = vsub.f32 %v1288_v48, %v1297_v13 }
 0x4e8   : >> { %v1310_v15 = vmul.f32 1.442695, %v1305_v14  ;;  %v3014_v14 = vld [vmem:[%s3477_s27 + $0x20] sm:$0xff]  }
 0x4ea   : >> { %3102 = vpow2.f32 %v1310_v15  ;;  %v3015_v15 = vld [vmem:[%s3477_s27 + $0x28] sm:$0xff]  }
 0x4ed   : >> { %v1300_v16 = vpop.xlane.xlu1 %1299 }
 0x4ee   : >> { %v1306_v17 = vsub.f32 %v1289_v54, %v1300_v16  ;;  %v3016_v16 = vld [vmem:[%s3477_s27 + $0x30] sm:$0xff]  }
 0x4f0   : >> { %v1312_v18 = vmul.f32 1.442695, %v1306_v17  ;;  %v3017_v17 = vld [vmem:[%s3477_s27 + $0x38] sm:$0xff]  }
 0x4f2   : >> { %3104 = vpow2.f32 %v1312_v18 }
 0x4f4   : >> { %v3103_v19 = vpop.eup %3102 }
 0x4f5   : >> { %v1319_v22 = vsel %vm1291_vm4, %v3103_v19, 0.0  ;;  %v1303_v26 = vpop.xlane.xlu1 %1302 }
 0x4f6   : >> { %1320 = vadd.xlane.f32.xlu1 %v1319_v22  ;;  %v1307_v27 = vsub.f32 %v1290_v60, %v1303_v26  ;;  %v3011_v60 = vld [vmem:[%s3477_s27 + $0x8] sm:$0xff]  }
 0x4f8   : >> { %v1314_v28 = vmul.f32 1.442695, %v1307_v27 }
 0x4fc   : >> { %v3105_v23 = vpop.eup %3104 }
 0x4fd   : >> { %v1322_v24 = vsel %vm1291_vm4, %v3105_v23, 0.0 }
 0x4fe   : >> { %1323 = vadd.xlane.f32.xlu0 %v1322_v24 }
 0x507   : >> { %1089 = vrot.lane.b32.xlu1 %v3409_v8, %s3170_s30 }
 0x510   : >> { %v1318_v25 = vpop.xlane.xlu0 %1317 }
 0x511   : >> { %3106 = vrcp.f32 %v1318_v25 }
 0x512   : >> { %3108 = vpow2.f32 %v1314_v28 }
 0x514   : >> { %1086 = vrot.lane.b32.xlu0 %v3409_v8, %s3171_s5 }
 0x51b   : >> { %v3107_v29 = vpop.eup %3106 }
 0x51c   : >> { %v1332_v30 = vmul.f32 %v3107_v29, %v3101_v11  ;;  %v3109_v32 = vpop.eup %3108 }
 0x51d   : >> { %v1325_v33 = vsel %vm1291_vm4, %v3109_v32, 0.0 }
 0x51e   : >> { %v1336_v31 = vpack.c.bf16 %v1332_v30, %v1332_v30  ;;  %v2641_v30 = vld [vmem:[%s1566_s25] ss:$0 sm:$0xff] }
 0x520   : >> { %2881 = vmatmul.mubr.msk.bf16.vlgmr.msra.gmra.mrb[4].mxu0 %vm1291_vm4, %v1336_v31 }
 0x521   : >> { %2892 = vmatprep.mubr.msk.bf16.mxu0 %vm3169_vm2, %v3167_v21 }
 0x52b   : >> { %1326 = vadd.xlane.f32.xlu1 %v1325_v33 }
 0x53c   : >> { %1092 = vrot.lane.b32.xlu1 %v3409_v8, %s3172_s23 }
 0x583   : >> { %v1321_v34 = vpop.xlane.xlu1 %1320 }
 0x584   : >> { %3110 = vrcp.f32 %v1321_v34 }
 0x587   : >> { %v1090_v35 = vpop.permute.xlu1 %1089 }
 0x588   : >> { %v1342_v36 = vpack.c.bf16 %v1090_v35, %v1090_v35 }
 0x58a   : >> { %v1441_v37 = vsel %vm1347_vm3, %v1342_v36, 0 }
 0x58b   : >> { %v1324_v38 = vpop.xlane.xlu0 %1323  ;;  %2891 = vmatpush3.bf16.msra.mxu0 %v1441_v37 }
 0x58c   : >> { %3112 = vrcp.f32 %v1324_v38  ;;  %2902 = vmatprep.subr.bf16.mxu0 %v3167_v21 }
 0x58e   : >> { %v3111_v39 = vpop.eup %3110 }
 0x58f   : >> { %v1087_v40 = vpop.permute.xlu0 %1086  ;;  %v1333_v41 = vmul.f32 %v3111_v39, %v3103_v19 }
 0x590   : >> { %v1341_v42 = vpack.c.bf16 %v1087_v40, %v1087_v40 }
 0x591   : >> { %v1337_v44 = vpack.c.bf16 %v1333_v41, %v1333_v41 }
 0x592   : >> { %v1395_v43 = vsel %vm1347_vm3, %v1341_v42, 0 }
 0x593   : >> { %2885 = vmatpush3.bf16.msra.mxu1 %v1395_v43 }
 0x594   : >> { %2896 = vmatprep.subr.bf16.mxu1 %v3167_v21 }
 0x596   : >> { %v3113_v8 = vpop.eup %3112  ;;  %2887 = vmatmul.mubr.msk.bf16.vlgmr.msra.gmra.mrb[20].mxu1 %vm1291_vm4, %v1337_v44 }
 0x597   : >> { %v1334_v46 = vmul.f32 %v3113_v8, %v3105_v23  ;;  %2898 = vmatprep.mubr.msk.bf16.mxu1 %vm3169_vm2, %v3167_v21 }
 0x599   : >> { %v1338_v47 = vpack.c.bf16 %v1334_v46, %v1334_v46 }
 0x59b   : >> { %2893 = vmatmul.mubr.msk.bf16.vlgmr.msra.gmra.mrb[8].mxu0 %vm1291_vm4, %v1338_v47 }
 0x59c   : >> { %2918 = vmatprep.mubr.msk.bf16.mxu0 %vm3169_vm2, %v3167_v21  ;;  %2903 = vmatpush3.bf16.msra.mxu0 %v3010_v59 }
 0x59d   : >> { %2904 = vmatprep.subr.bf16.mxu0 %v3167_v21 }
 0x5a0   : >> { %2905 = vmatpush3.bf16.msra.mxu0 %v3011_v60 }
 0x5a1   : >> { %2906 = vmatprep.subr.bf16.mxu0 %v3167_v21 }
 0x5a4   : >> { %2907 = vmatpush3.bf16.msra.mxu0 %v3012_v5 }
 0x5a5   : >> { %2908 = vmatprep.subr.bf16.mxu0 %v3167_v21 }
 0x5a8   : >> { %2909 = vmatpush3.bf16.msra.mxu0 %v3013_v10 }
 0x5a9   : >> { %2910 = vmatprep.subr.bf16.mxu0 %v3167_v21 }
 0x5ac   : >> { %2911 = vmatpush3.bf16.msra.mxu0 %v3014_v14  ;;  %v3066_v14 = vld [vmem:[%s3528_s26 + $0x40] sm:$0xff]  }
 0x5ad   : >> { %2912 = vmatprep.subr.bf16.mxu0 %v3167_v21 }
 0x5b0   : >> { %2913 = vmatpush3.bf16.msra.mxu0 %v3015_v15  ;;  %v3067_v15 = vld [vmem:[%s3528_s26 + $0xc0] sm:$0xff]  }
 0x5b1   : >> { %2914 = vmatprep.subr.bf16.mxu0 %v3167_v21 }
 0x5b4   : >> { %2915 = vmatpush3.bf16.msra.mxu0 %v3016_v16 }
 0x5b5   : >> { %2916 = vmatprep.subr.bf16.mxu0 %v3167_v21 }
 0x5b8   : >> { %v1327_v48 = vpop.xlane.xlu1 %1326  ;;  %2917 = vmatpush3.bf16.msra.mxu0 %v3017_v17 }
 0x5b9   : >> { %3114 = vrcp.f32 %v1327_v48 }
 0x5bc   : >> { %v1093_v49 = vpop.permute.xlu1 %1092 }
 0x5bd   : >> { %v1343_v50 = vpack.c.bf16 %v1093_v49, %v1093_v49 }
 0x5bf   : >> { %v1487_v51 = vsel %vm1347_vm3, %v1343_v50, 0 }
 0x5c0   : >> { %2897 = vmatpush3.bf16.msra.mxu1 %v1487_v51 }
 0x5c3   : >> { %v3115_v52 = vpop.eup %3114 }
 0x5c4   : >> { %v1335_v53 = vmul.f32 %v3115_v52, %v3109_v32 }
 0x5c6   : >> { %v1339_v54 = vpack.c.bf16 %v1335_v53, %v1335_v53 }
 0x5c8   : >> { %2899 = vmatmul.mubr.msk.bf16.vlgmr.msra.gmra.mrb[24].mxu1 %vm1291_vm4, %v1339_v54 }
 0x5c9   : >> { %1944 = vmatprep.mubr.bf16.mxu1 %v3168_v45 }
 0x5f3   : >> { %v1385_v55 = vpop.f32.mrb[4].mxu0 }
 0x5f4   : >> { %v2882_v56 = vpop.f32.mrb[5].mxu0 }
 0x5f5   : >> { %v1388_v57 = vpop.f32.mrb[6].mxu0 }
 0x5f6   : >> { %v2883_v58 = vpop.f32.mrb[7].mxu0 }
 0x669   : >> { %v1431_v0 = vpop.f32.mrb[20].mxu1 }
 0x66a   : >> { %1530 = vrot.lane.b32.xlu0 %v1431_v0, %s3172_s23  ;;  %v2888_v3 = vpop.f32.mrb[21].mxu1  ;;  %s3511_s23 = scalar_lea.vmem %s3673_s15, %s2734_s4 }
 0x66b   : >> { %v1434_v6 = vpop.f32.mrb[22].mxu1  ;;  %v3021_v37 = vld [vmem:[%s3511_s23 + $0x8] ss:$16 sps:$4 sm:$0xff]   ;;  %v3023_v38 = vld [vmem:[%s3511_s23 + $0xc] ss:$16 sps:$4 sm:$0xff]  }
 0x66c   : >> { %v2889_v7 = vpop.f32.mrb[23].mxu1  ;;  %v3024_v39 = vld [vmem:[%s3511_s23 + $0x20] ss:$16 sps:$4 sm:$0xff]   ;;  %v3026_v40 = vld [vmem:[%s3511_s23 + $0x24] ss:$16 sps:$4 sm:$0xff]   ;;  %1953 = vmatprep.subr.bf16.mxu0 %v3023_v38  ;;  %v3080_v38 = vld [vmem:[%s3528_s26 + $0x18] sm:$0xff]  }
 0x66d   : >> { %v3027_v41 = vld [vmem:[%s3511_s23 + $0x28] ss:$16 sps:$4 sm:$0xff]   ;;  %v3029_v42 = vld [vmem:[%s3511_s23 + $0x2c] ss:$16 sps:$4 sm:$0xff]   ;;  %v3030_v43 = vld [vmem:[%s3511_s23 + $0x40] ss:$16 sps:$4 sm:$0xff]  }
 0x66e   : >> { %v1477_v9 = vpop.f32.mrb[8].mxu0  ;;  %v3032_v44 = vld [vmem:[%s3511_s23 + $0x44] ss:$16 sps:$4 sm:$0xff]   ;;  %v3033_v8 = vld [vmem:[%s3511_s23 + $0x48] ss:$16 sps:$4 sm:$0xff]  }
 0x66f   : >> { %1534 = vrot.lane.b32.xlu1 %v1477_v9, %s3170_s30  ;;  %v2894_v11 = vpop.f32.mrb[9].mxu0  ;;  %v3035_v46 = vld [vmem:[%s3511_s23 + $0x4c] ss:$16 sps:$4 sm:$0xff]   ;;  %v3038_v51 = vld [vmem:[%s3511_s23 + $0x64] ss:$16 sps:$4 sm:$0xff]   ;;  %s1665_s30 = scalar_lea.vmem %s3672_s14, %s3162_s3 }
 0x670   : >> { %v1480_v12 = vpop.f32.mrb[10].mxu0  ;;  %v3041_v52 = vld [vmem:[%s3511_s23 + $0x6c] ss:$16 sps:$4 sm:$0xff]   ;;  %v3036_v53 = vld [vmem:[%s3511_s23 + $0x60] ss:$16 sps:$4 sm:$0xff]  }
 0x671   : >> { %v2895_v13 = vpop.f32.mrb[11].mxu0  ;;  %v3039_v54 = vld [vmem:[%s3511_s23 + $0x68] ss:$16 sps:$4 sm:$0xff]   ;;  %v3047_v56 = vld [vmem:[%s3511_s23 + $0x8c] ss:$16 sps:$4 sm:$0xff]  }
 0x672   : >> { %v3042_v57 = vld [vmem:[%s3511_s23 + $0x80] ss:$16 sps:$4 sm:$0xff]   ;;  %v3045_v58 = vld [vmem:[%s3511_s23 + $0x88] ss:$16 sps:$4 sm:$0xff]   ;;  %v3050_v59 = vld [vmem:[%s3511_s23 + $0xa4] ss:$16 sps:$4 sm:$0xff]  }
 0x673   : >> { %v3053_v60 = vld [vmem:[%s3511_s23 + $0xac] ss:$16 sps:$4 sm:$0xff]   ;;  %v3048_v0 = vld [vmem:[%s3511_s23 + $0xa0] ss:$16 sps:$4 sm:$0xff]   ;;  %v3051_v3 = vld [vmem:[%s3511_s23 + $0xa8] ss:$16 sps:$4 sm:$0xff]  }
 0x674   : >> { %v3056_v5 = vld [vmem:[%s3511_s23 + $0xc4] ss:$16 sps:$4 sm:$0xff]   ;;  %v3059_v6 = vld [vmem:[%s3511_s23 + $0xcc] ss:$16 sps:$4 sm:$0xff]   ;;  %v3054_v7 = vld [vmem:[%s3511_s23 + $0xc0] ss:$16 sps:$4 sm:$0xff]  }
 0x675   : >> { %v3057_v9 = vld [vmem:[%s3511_s23 + $0xc8] ss:$16 sps:$4 sm:$0xff]   ;;  %v3062_v10 = vld [vmem:[%s3511_s23 + $0xe4] ss:$16 sps:$4 sm:$0xff]   ;;  %v3060_v11 = vld [vmem:[%s3511_s23 + $0xe0] ss:$16 sps:$4 sm:$0xff]  }
 0x676   : >> { %v3063_v12 = vld [vmem:[%s3511_s23 + $0xe8] ss:$16 sps:$4 sm:$0xff]   ;;  %v3065_v13 = vld [vmem:[%s3511_s23 + $0xec] ss:$16 sps:$4 sm:$0xff]  }
 0x69b   : >> { %v1523_v18 = vpop.f32.mrb[24].mxu1 }
 0x69c   : >> { %1538 = vrot.lane.b32.xlu0 %v1523_v18, %s3171_s5  ;;  %v2900_v19 = vpop.f32.mrb[25].mxu1  ;;  %s2654_s5 = sshll.u32 %s3162_s3, 2  ;;  %s769_s3 = sadd.s32 1, %s3162_s3  }
 0x69d   : >> { %v1526_v22 = vpop.f32.mrb[26].mxu1  ;;  %s1729_s1 = scalar_lea.vmem %s3674_s16, %s2654_s5  ;;  %p766_p4 = scmp.ge.s32.totalorder %s769_s3, 2  }
 0x69e   : >> { %v2901_v23 = vpop.f32.mrb[27].mxu1  ;;  %v2650_v22 = vld [vmem:[%s1663_s29] ss:$0 sm:$0xff] }
 0x6dc   : >> { %v1531_v24 = vpop.permute.xlu0 %1530 }
 0x6dd   : >> { %v1541_v26 = vsel %vm696_vm1, %v1385_v55, %v1531_v24  ;;  %v3044_v55 = vld [vmem:[%s3511_s23 + $0x84] ss:$16 sps:$4 sm:$0xff]   ;;  %v2651_v24 = vld [vmem:[%s1665_s30] ss:$0 sm:$0xff] }
 0x6e1   : >> { %v1535_v25 = vpop.permute.xlu1 %1534 }
 0x6e2   : >> { %v1543_v27 = vsel %vm1542_vm5, %v1541_v26, %v1535_v25 }
 0x70e   : >> { %v1539_v28 = vpop.permute.xlu0 %1538 }
 0x70f   : >> { %v1545_v29 = vsel %vm1544_vm6, %v1543_v27, %v1539_v28  ;;  %v3068_v27 = vld [vmem:[%s3528_s26] sm:$0xff]  }
 0x710   : >> { %v1546_v21 = vpack.c.bf16 %v1545_v29, %v1545_v29  ;;  %v3069_v28 = vld [vmem:[%s3528_s26 + $0x80] sm:$0xff]  }
 0x712   : >> { %2919 = vmatmul.mubr.bf16.vlgmr.msra.gmra.mrb[12].mxu0 %v1546_v21  ;;  %v3070_v21 = vld [vmem:[%s3528_s26 + $0x48] sm:$0xff]  }
 0x713   : >> { %1985 = vmatprep.mubr.bf16.mxu0 %v3168_v45  ;;  %v3020_v45 = vld [vmem:[%s3511_s23 + $0x4] ss:$16 sps:$4 sm:$0xff]   ;;  %1954 = vmatpush1.bf16.msra.mxu0 %v3021_v37  ;;  %v3079_v37 = vld [vmem:[%s3528_s26 + $0xd8] sm:$0xff]  }
 0x714   : >> { %1912 = vmatprep.subr.bf16.mxu1 %v3020_v45  ;;  %1955 = vmatprep.subr.bf16.mxu0 %v3029_v42  ;;  %v3078_v45 = vld [vmem:[%s3528_s26 + $0x58] sm:$0xff]   ;;  %v3084_v42 = vld [vmem:[%s3528_s26 + $0x20] sm:$0xff]  }
 0x717   : >> { %1956 = vmatpush1.bf16.msra.mxu0 %v3027_v41  ;;  %v3083_v41 = vld [vmem:[%s3528_s26 + $0xe0] sm:$0xff]  }
 0x718   : >> { %1957 = vmatprep.subr.bf16.mxu0 %v3035_v46  ;;  %v3088_v46 = vld [vmem:[%s3528_s26 + $0x28] sm:$0xff]  }
 0x71b   : >> { %1958 = vmatpush1.bf16.msra.mxu0 %v3033_v8  ;;  %v3087_v8 = vld [vmem:[%s3528_s26 + $0xe8] sm:$0xff]  }
 0x71c   : >> { %1959 = vmatprep.subr.bf16.mxu0 %v3041_v52  ;;  %v3094_v52 = vld [vmem:[%s3528_s26 + $0x78] sm:$0xff]  }
 0x71f   : >> { %1960 = vmatpush1.bf16.msra.mxu0 %v3039_v54  ;;  %v3096_v54 = vld [vmem:[%s3528_s26 + $0x38] sm:$0xff]  }
 0x720   : >> { %1961 = vmatprep.subr.bf16.mxu0 %v3047_v56  ;;  %v1730_v56 = vld [vmem:[%s1729_s1] sm:$0xf] }
 0x723   : >> { %1962 = vmatpush1.bf16.msra.mxu0 %v3045_v58  ;;  %v1735_v58 = vrot.slane %v1730_v56, %v843_v4 }
 0x724   : >> { %1963 = vmatprep.subr.bf16.mxu0 %v3053_v60  ;;  %v1739_v60 = vrot.slane %v1730_v56, %v847_v2 }
 0x727   : >> { %1964 = vmatpush1.bf16.msra.mxu0 %v3051_v3 }
 0x728   : >> { %1965 = vmatprep.subr.bf16.mxu0 %v3059_v6 }
 0x72b   : >> { %1966 = vmatpush1.bf16.msra.mxu0 %v3057_v9 }
 0x72c   : >> { %1967 = vmatprep.subr.bf16.mxu0 %v3065_v13 }
 0x72f   : >> { %1968 = vmatpush1.bf16.msra.mxu0 %v3063_v12 }
 0x730   : >> { %2795 = vmatprep.subr.bf16.mxu0 %v3067_v15 }
 0x7e5   : >> { %v1656_v31 = vpop.f32.mrb[12].mxu0 }
 0x7e6   : >> { %v1657_v32 = vadd.f32 %v2641_v30, %v1656_v31  ;;  %v2920_v33 = vpop.f32.mrb[13].mxu0  ;;  %v3071_v30 = vld [vmem:[%s3528_s26 + $0xc8] sm:$0xff]  }
 0x7e7   : >> { %v1659_v34 = vpop.f32.mrb[14].mxu0  ;;  %v3072_v31 = vld [vmem:[%s3528_s26 + $0x8] sm:$0xff]   ;;  %v3074_v33 = vld [vmem:[%s3528_s26 + $0x50] sm:$0xff]  }
 0x7e8   : >> { %v3504_v35 = vadd.f32 %v3158_v20, %v1657_v32  ;;  %v2921_v36 = vpop.f32.mrb[15].mxu0  ;;  %v3018_v20 = vld [vmem:[%s3511_s23] ss:$16 sps:$4 sm:$0xff]   ;;  %v3073_v32 = vld [vmem:[%s3528_s26 + $0x88] sm:$0xff]  }
 0x7e9   : >> { %1913 = vmatpush1.bf16.msra.mxu1 %v3018_v20  ;;  %v3075_v34 = vld [vmem:[%s3528_s26 + $0xd0] sm:$0xff]  }
 0x7ea   : >> { %1667 = vadd.xlane.f32.xlu1 %v3504_v35  ;;  %1914 = vmatprep.subr.bf16.mxu1 %v3026_v40  ;;  %v3076_v36 = vld [vmem:[%s3528_s26 + $0x10] sm:$0xff]   ;;  %v3082_v40 = vld [vmem:[%s3528_s26 + $0x60] sm:$0xff]  }
 0x7eb   : >> { %v3077_v20 = vld [vmem:[%s3528_s26 + $0x90] sm:$0xff]  }
 0x7ed   : >> { %1915 = vmatpush1.bf16.msra.mxu1 %v3024_v39  ;;  %v3081_v39 = vld [vmem:[%s3528_s26 + $0x98] sm:$0xff]  }
 0x7ee   : >> { %1916 = vmatprep.subr.bf16.mxu1 %v3032_v44  ;;  %v3086_v44 = vld [vmem:[%s3528_s26 + $0x68] sm:$0xff]  }
 0x7f1   : >> { %1917 = vmatpush1.bf16.msra.mxu1 %v3030_v43  ;;  %v3085_v43 = vld [vmem:[%s3528_s26 + $0xa0] sm:$0xff]  }
 0x7f2   : >> { %1918 = vmatprep.subr.bf16.mxu1 %v3038_v51  ;;  %v3093_v51 = vld [vmem:[%s3528_s26 + $0xb0] sm:$0xff]  }
 0x7f5   : >> { %1919 = vmatpush1.bf16.msra.mxu1 %v3036_v53  ;;  %v3095_v53 = vld [vmem:[%s3528_s26 + $0xf8] sm:$0xff]  }
 0x7f6   : >> { %1920 = vmatprep.subr.bf16.mxu1 %v3044_v55  ;;  %v3097_v55 = vld [vmem:[%s3528_s26 + $0xb8] sm:$0xff]  }
 0x7f9   : >> { %1921 = vmatpush1.bf16.msra.mxu1 %v3042_v57  ;;  %v1746_v57 = vsub.s32 3, %v3397_v62 }
 0x7fa   : >> { %1922 = vmatprep.subr.bf16.mxu1 %v3050_v59  ;;  %v1743_v59 = vrot.slane %v1730_v56, %v851_v63 }
 0x7fd   : >> { %1923 = vmatpush1.bf16.msra.mxu1 %v3048_v0  ;;  %v1747_v0 = vrot.slane %v1730_v56, %v1746_v57  ;;  %v3129_v57 = vld [vmem:[%s3677_s19 + $0x18] sm:$0xff] (%p766_p4)  }
 0x7fe   : >> { %1924 = vmatprep.subr.bf16.mxu1 %v3056_v5 }
 0x801   : >> { %1925 = vmatpush1.bf16.msra.mxu1 %v3054_v7 }
 0x802   : >> { %1926 = vmatprep.subr.bf16.mxu1 %v3062_v10 }
 0x805   : >> { %1927 = vmatpush1.bf16.msra.mxu1 %v3060_v11 }
 0x806   : >> { %2773 = vmatprep.subr.bf16.mxu1 %v3066_v14 }
 0x877   : >> { %v1668_v47 = vpop.xlane.xlu1 %1667 }
 0x878   : >> { %v1669_v48 = vmul.f32 0.0078125, %v1668_v47  ;;  %v3089_v47 = vld [vmem:[%s3528_s26 + $0xa8] sm:$0xff]  }
 0x87a   : >> { %v1670_v49 = vsub.f32 %v3504_v35, %v1669_v48  ;;  %v3090_v48 = vld [vmem:[%s3528_s26 + $0x70] sm:$0xff]  }
 0x87c   : >> { %v1671_v50 = vmul.f32 %v1670_v49, %v1670_v49 }
 0x87e   : >> { %1672 = vadd.xlane.f32.xlu0 %v1671_v50  ;;  %v3092_v50 = vld [vmem:[%s3528_s26 + $0x30] sm:$0xff]  }
 0x90b   : >> { %v1673_v16 = vpop.xlane.xlu0 %1672 }
 0x90c   : >> { %v1674_v17 = vmul.f32 0.0078125, %v1673_v16 }
 0x90e   : >> { %v1675_v18 = vadd.f32 1e-05, %v1674_v17 }
 0x910   : >> { %3116 = vrsqrt.f32 %v1675_v18 }
 0x91a   : >> { %v3117_v19 = vpop.eup %3116 }
 0x91b   : >> { %v1677_v23 = vmul.f32 %v3117_v19, %v1670_v49  ;;  %v3091_v49 = vld [vmem:[%s3528_s26 + $0xf0] sm:$0xff]  }
 0x91d   : >> { %v1684_v25 = vmul.f32 %v2650_v22, %v1677_v23 }
 0x91f   : >> { %v1691_v26 = vadd.f32 %v2651_v24, %v1684_v25 }
 0x921   : >> { %v1692_v29 = vpack.c.bf16 %v1691_v26, %v1691_v26 }
 0x923   : >> { %1945 = vmatmul.mubr.bf16.vlgmr.msra.gmra.mrb[28].mxu1 %v1692_v29  ;;  %1986 = vmatmul.mubr.bf16.vlgmr.msra.gmra.mrb[16].mxu0 %v1692_v29 }
 0x924   : >> { %2774 = vmatpush3.bf16.msra.mxu1 %v3068_v27  ;;  %2796 = vmatpush3.bf16.msra.mxu0 %v3069_v28 }
 0x925   : >> { %2775 = vmatprep.subr.bf16.mxu1 %v3070_v21  ;;  %2797 = vmatprep.subr.bf16.mxu0 %v3071_v30 }
 0x928   : >> { %2776 = vmatpush3.bf16.msra.mxu1 %v3072_v31  ;;  %2798 = vmatpush3.bf16.msra.mxu0 %v3073_v32 }
 0x929   : >> { %2777 = vmatprep.subr.bf16.mxu1 %v3074_v33  ;;  %2799 = vmatprep.subr.bf16.mxu0 %v3075_v34 }
 0x92c   : >> { %2778 = vmatpush3.bf16.msra.mxu1 %v3076_v36  ;;  %2800 = vmatpush3.bf16.msra.mxu0 %v3077_v20 }
 0x92d   : >> { %2779 = vmatprep.subr.bf16.mxu1 %v3078_v45  ;;  %2801 = vmatprep.subr.bf16.mxu0 %v3079_v37 }
 0x930   : >> { %2780 = vmatpush3.bf16.msra.mxu1 %v3080_v38  ;;  %2802 = vmatpush3.bf16.msra.mxu0 %v3081_v39  ;;  %v2688_v39 = vld [vmem:[%s2084_s28] ss:$0 sm:$0xff] }
 0x931   : >> { %2781 = vmatprep.subr.bf16.mxu1 %v3082_v40  ;;  %2803 = vmatprep.subr.bf16.mxu0 %v3083_v41 }
 0x934   : >> { %2782 = vmatpush3.bf16.msra.mxu1 %v3084_v42  ;;  %2804 = vmatpush3.bf16.msra.mxu0 %v3085_v43 }
 0x935   : >> { %2783 = vmatprep.subr.bf16.mxu1 %v3086_v44  ;;  %2805 = vmatprep.subr.bf16.mxu0 %v3087_v8 }
 0x938   : >> { %2784 = vmatpush3.bf16.msra.mxu1 %v3088_v46  ;;  %2806 = vmatpush3.bf16.msra.mxu0 %v3089_v47 }
 0x939   : >> { %2785 = vmatprep.subr.bf16.mxu1 %v3090_v48  ;;  %2807 = vmatprep.subr.bf16.mxu0 %v3091_v49 }
 0x93c   : >> { %2786 = vmatpush3.bf16.msra.mxu1 %v3092_v50  ;;  %2808 = vmatpush3.bf16.msra.mxu0 %v3093_v51  ;;  %v3126_v51 = vld [vmem:[%s3677_s19] sm:$0xff] (%p766_p4)  }
 0x93d   : >> { %2787 = vmatprep.subr.bf16.mxu1 %v3094_v52  ;;  %2809 = vmatprep.subr.bf16.mxu0 %v3095_v53  ;;  %v3128_v52 = vld [vmem:[%s3677_s19 + $0x10] sm:$0xff] (%p766_p4)  }
 0x940   : >> { %2788 = vmatpush3.bf16.msra.mxu1 %v3096_v54  ;;  %2810 = vmatpush3.bf16.msra.mxu0 %v3097_v55 }
 0x941   : > { %2922 = vmatprep.subr.bf16.mxu0 (%p766_p4), %v3164_v1 }
 0x9f6   : >> { %v1946_v3 = vpop.f32.mrb[28].mxu1  ;;  %v1987_v5 = vpop.f32.mrb[16].mxu0 }
 0x9f7   : >> { %v1947_v6 = vadd.f32 %v1946_v3, %v1735_v58  ;;  %v1988_v7 = vadd.f32 %v1987_v5, %v1743_v59  ;;  %v1948_v9 = vpop.f32.mrb[29].mxu1  ;;  %v1989_v10 = vpop.f32.mrb[17].mxu0  ;;  %v3130_v58 = vld [vmem:[%s3677_s19 + $0x20] sm:$0xff] (%p766_p4)   ;;  %v3131_v59 = vld [vmem:[%s3677_s19 + $0x28] sm:$0xff] (%p766_p4)  }
 0x9f8   : >> { %v1949_v11 = vadd.f32 %v1948_v9, %v1739_v60  ;;  %v1990_v12 = vadd.f32 %v1989_v10, %v1747_v0  ;;  %v1950_v13 = vpop.f32.mrb[30].mxu1  ;;  %v1991_v14 = vpop.f32.mrb[18].mxu0  ;;  %v3132_v60 = vld [vmem:[%s3677_s19 + $0x30] sm:$0xff] (%p766_p4)   ;;  %v3133_v0 = vld [vmem:[%s3677_s19 + $0x38] sm:$0xff] (%p766_p4)  }
 0x9f9   : >> { %v1998_v15 = vmul.f32 0.70710677, %v1947_v6  ;;  %v2000_v16 = vmul.f32 0.70710677, %v1988_v7  ;;  %v1951_v63 = vpop.f32.mrb[31].mxu1  ;;  %v1992_v18 = vpop.f32.mrb[19].mxu0 }
 0x9fa   : >> { %v1999_v4 = vmul.f32 0.70710677, %v1949_v11  ;;  %v2001_v17 = vmul.f32 0.70710677, %v1990_v12  ;;  %v1994_v23 = vmul.f32 0.5, %v1947_v6  ;;  %v1996_v26 = vmul.f32 0.5, %v1988_v7 }
 0x9fb   : >> { %3118 = verf.f32 %v1998_v15  ;;  %v1995_v27 = vmul.f32 0.5, %v1949_v11  ;;  %v1997_v21 = vmul.f32 0.5, %v1990_v12  ;;  %v2721_v11 = vld [vmem:[%s3678_s20] ss:$0 sm:$0xff] (%p766_p4)  ;;  %v2490_v18 = vand.u32 (%p766_p4), 127, %v841_v61 }
 0x9fc   : >> { %3120 = verf.f32 %v2000_v16 }
 0x9fd   : >> { %3122 = verf.f32 %v1999_v4  ;;  %vm2496_vm7 = vcmp.eq.s32.totalorder (%p766_p4), %v2490_v18, 33 }
 0x9fe   : >> { %3124 = verf.f32 %v2001_v17 }
 0xa05   : >> { %v3119_v62 = vpop.eup %3118 }
 0xa06   : >> { %v3121_v2 = vpop.eup %3120  ;;  %v2006_v19 = vadd.f32 1.0, %v3119_v62 }
 0xa07   : >> { %v3123_v22 = vpop.eup %3122  ;;  %v2008_v24 = vadd.f32 1.0, %v3121_v2 }
 0xa08   : >> { %v3125_v25 = vpop.eup %3124  ;;  %v2007_v28 = vadd.f32 1.0, %v3123_v22  ;;  %v2010_v29 = vmul.f32 %v2006_v19, %v1994_v23 }
 0xa09   : >> { %v2009_v30 = vadd.f32 1.0, %v3125_v25  ;;  %v2012_v31 = vmul.f32 %v2008_v24, %v1996_v26 }
 0xa0a   : >> { %v2011_v32 = vmul.f32 %v2007_v28, %v1995_v27  ;;  %v2014_v36 = vpack.c.bf16 %v2010_v29, %v2010_v29 }
 0xa0b   : >> { %v2013_v33 = vmul.f32 %v2009_v30, %v1997_v21  ;;  %v2016_v45 = vpack.c.bf16 %v2012_v31, %v2012_v31 }
 0xa0c   : >> { %v2015_v34 = vpack.c.bf16 %v2011_v32, %v2011_v32 }
 0xa0d   : >> { %v2017_v20 = vpack.c.bf16 %v2013_v33, %v2013_v33 }
 0xa0e   : >> { %2316 = vmatprep.mubr.bf16.mxu1 %v2015_v34 }
 0xa0f   : >> { %2356 = vmatprep.mubr.bf16.mxu0 %v2017_v20  ;;  %2317 = vmatmul.mubr.bf16.vlgmr.msra.gmra.mrb[32].mxu1 %v2014_v36 }
 0xa10   : >> { %2357 = vmatmul.mubr.bf16.vlgmr.msra.gmra.mrb[20].mxu0 %v2016_v45 }
 0xa11   : > { %2938 = vmatprep.mubr.msk.bf16.mxu0 (%p766_p4), %vm3165_vm0, %v3164_v1  ;;  %2923 = vmatpush3.bf16.msra.mxu0 (%p766_p4), %v3126_v51 }
 0xa12   : > { %2924 = vmatprep.subr.bf16.mxu0 (%p766_p4), %v3164_v1 }
 0xae2   : >> { %v2789_v37 = vpop.f32.mrb[32].mxu1 }
 0xae3   : >> { %v2811_v38 = vpop.f32.mrb[20].mxu0  ;;  %v2790_v40 = vpop.f32.mrb[33].mxu1 }
 0xae4   : >> { %v2791_v41 = vadd.f32 %v2790_v40, %v2789_v37  ;;  %v2812_v42 = vpop.f32.mrb[21].mxu0  ;;  %v2792_v43 = vpop.f32.mrb[34].mxu1 }
 0xae5   : >> { %v2813_v44 = vadd.f32 %v2812_v42, %v2811_v38  ;;  %v2814_v8 = vpop.f32.mrb[22].mxu0  ;;  %v2793_v46 = vpop.f32.mrb[35].mxu1 }
 0xae6   : >> { %v2319_v47 = vadd.f32 %v2791_v41, %v2688_v39  ;;  %v2815_v48 = vpop.f32.mrb[23].mxu0  ;;  %768 = sbr.rel (!%p766_p4) target bundleno = 244 (0xf4), region = 156 }
 0xae8   : >> { %v2359_v49 = vadd.f32 %v2813_v44, %v2319_v47 }
 0xaea   : >> { %v2364_v50 = vadd.f32 %v2359_v49, %v3504_v35   ;;  %v3127_v35 = vld [vmem:[%s3677_s19 + $0x8] sm:$0xff] (%p766_p4)  }
 0xaeb   : > { %2925 = vmatpush3.bf16.msra.mxu0 (%p766_p4), %v3127_v35 }
 0xaec   : >> { %v3694_v20 = vmov %v2364_v50  ;;  %2365 = vadd.xlane.f32.xlu0 (%p766_p4), %v2364_v50  ;;  %2926 = vmatprep.subr.bf16.mxu0 (%p766_p4), %v3164_v1 }
 0xaef   : > { %2927 = vmatpush3.bf16.msra.mxu0 %v3128_v52 }
 0xaf0   : > { %2928 = vmatprep.subr.bf16.mxu0 %v3164_v1 }
 0xaf3   : > { %2929 = vmatpush3.bf16.msra.mxu0 %v3129_v57 }
 0xaf4   : > { %2930 = vmatprep.subr.bf16.mxu0 %v3164_v1 }
 0xaf7   : > { %2931 = vmatpush3.bf16.msra.mxu0 %v3130_v58 }
 0xaf8   : > { %2932 = vmatprep.subr.bf16.mxu0 %v3164_v1 }
 0xafb   : > { %2933 = vmatpush3.bf16.msra.mxu0 %v3131_v59 }
 0xafc   : > { %2934 = vmatprep.subr.bf16.mxu0 %v3164_v1 }
 0xaff   : > { %2935 = vmatpush3.bf16.msra.mxu0 %v3132_v60 }
 0xb00   : > { %2936 = vmatprep.subr.bf16.mxu0 %v3164_v1 }
 0xb03   : > { %2937 = vmatpush3.bf16.msra.mxu0 %v3133_v0 }
 0xb79   : > { %v2366_v53 = vpop.xlane.xlu0 %2365 }
 0xb7a   : > { %v2368_v54 = vmul.f32 0.0078125, %v2366_v53 }
 0xb7c   : > { %v2369_v55 = vsub.f32 %v2364_v50, %v2368_v54 }
 0xb7e   : > { %v2370_v56 = vmul.f32 %v2369_v55, %v2369_v55 }
 0xb80   : > { %2371 = vadd.xlane.f32.xlu0 %v2370_v56 }
 0xc0d   : > { %v2372_v3 = vpop.xlane.xlu0 %2371 }
 0xc0e   : > { %v2373_v5 = vmul.f32 0.0078125, %v2372_v3 }
 0xc10   : > { %v2374_v6 = vadd.f32 1e-05, %v2373_v5 }
 0xc12   : > { %3134 = vrsqrt.f32 %v2374_v6 }
 0xc1c   : > { %v3135_v7 = vpop.eup %3134 }
 0xc1d   : > { %v2376_v9 = vmul.f32 %v3135_v7, %v2369_v55 }
 0xc1f   : > { %v2377_v10 = vpack.c.bf16 %v2376_v9, %v2376_v9 }
 0xc21   : > { %2939 = vmatmul.mubr.bf16.vlgmr.msra.gmra.mrb[0].mxu0 %v2377_v10 }
 0xcf4   : > { %v2483_v12 = vpop.f32.mrb[0].mxu0 }
 0xcf5   : > { %v2484_v13 = vadd.f32 %v2721_v11, %v2483_v12  ;;  %v2940_v14 = vpop.f32.mrb[1].mxu0 }
 0xcf6   : > { %v2486_v15 = vpop.f32.mrb[2].mxu0 }
 0xcf7   : > { %v2491_v16 = vsub.f32 0.0, %v2484_v13  ;;  %v2941_v1 = vpop.f32.mrb[3].mxu0 }
 0xcf9   : > { %v2492_v4 = vmul.f32 1.442695, %v2491_v16 }
 0xcfb   : > { %3136 = vpow2.f32 %v2492_v4 }
 0xd05   : > { %v3137_v17 = vpop.eup %3136 }
 0xd06   : > { %v2494_v63 = vadd.f32 1.0, %v3137_v17 }
 0xd08   : > { %3138 = vrcp.f32 %v2494_v63 }
 0xd12   : > { %v3139_v62 = vpop.eup %3138 }
 0xd13   : > { %v2497_v2 = vsel %vm2496_vm7, %v3139_v62, %v2484_v13 }
 0xd14   : > { %2498 = vst [vmem:[%s668_s24] sm:$0xff] %v2497_v2 }
 0xd15 PF: > { %s31_s2 = sadd.s32 1, %s3154_s2  }
 0xd16   : > { %p28_p5 = scmp.ge.s32.totalorder %s31_s2, 4  }
 0xd18   :  { %30 = sbr.rel (!%p28_p5) target bundleno = 7 (0x7), region = 167 }

</bundles_post_ra>
